<compile_context>
chip_gen: v7x
topology: tpu7x:2x2x1
jax: 0.10.0
libtpu: 0.0.40
codegen_flags: <defaults>
</compile_context>

<pallas_src>
import jax
import jax.numpy as jnp
from jax import lax
from jax.experimental import pallas as pl
from jax.experimental.pallas import tpu as pltpu

# ----------------------------- configuration ------------------------------ #
ITERATIONS = 2
N_PRIMAL = 2                       # primal channels (>=2: forward slices [:, 1:2])
N_DUAL = 2                         # dual channels   (>=1: forward slices [:, 0:1])
H = W = 16                         # small spatial size consistent with the module
HW = H * W                         # 256 -> lane-dense (multiple of 128)
HIDDEN = 8                         # hidden channels of each primal/dual CNN block
COUT_MAX = HIDDEN
CIN_MAX = HIDDEN
PRIMAL_SHAPE = (N_PRIMAL, H, W)
DUAL_SHAPE = (N_DUAL, H, W)

# 3x3 taps in (dy, dx) row-major order: t = (dy+1)*3 + (dx+1) = ky*3 + kx
TAPS = tuple((dy, dx) for dy in (-1, 0, 1) for dx in (-1, 0, 1))

# conv slot -> (branch, w name, b name, Cout, Cin_total)
_CONVS = (
    ("dual",   "w1", "b1", HIDDEN,   N_DUAL + 2),     # concat([h, A(f2), g])
    ("dual",   "w2", "b2", N_DUAL,   HIDDEN),
    ("primal", "w1", "b1", HIDDEN,   N_PRIMAL + 1),   # concat([f, AT(h1)])
    ("primal", "w2", "b2", N_PRIMAL, HIDDEN),
)


# TODO(synk): the real forward/adjoint operators (e.g. a Radon transform) are
# constructor-injected in the PyTorch module; modeled here as identity maps,
# both inside the kernel and in the pure-JAX reference.
def forward_operator(f):   # green_arrow: primal -> dual
    return f


def adjoint_operator(h):   # yellow_arrow: dual -> primal
    return h


# ------------------------------ fused kernel ------------------------------- #
def _lpd_fused_kernel(g_ref, m_ref, w_ref, b_ref, o_ref):
    """One grid step = `batch_block` images.  Both LPD iterations, all 8
    convs, the channel 'concat', the zero-pad halo and the residual adds stay
    VMEM/vreg resident.  Activations are lane-dense (C, batch_block*HW)."""
    n = g_ref.shape[1]                               # batch_block * HW
    g = g_ref[...]                                   # (1, n) float32

    def conv3x3(x, k, c_idx, cout, *, relu=False, residual=None):
        """3x3 'same' conv on an already-concatenated (Cin, n) slab.
        One roll + one mask-mul + one MXU matmul per tap."""
        cin = x.shape[0]
        # Phase 1: rolled+masked tap slabs (XLU roll + VPU mask, shared
        # across all channels of the concatenated input).
        xts = []
        for t, (dy, dx) in enumerate(TAPS):
            shift = (-(dy * W + dx)) % n             # output[p] <- x[p + dy*W + dx]
            if shift == 0:                           # center tap: always in-bounds
                xts.append(x)
            else:
                xts.append(pltpu.roll(x, shift=shift, axis=1) * m_ref[t:t + 1, :])
        # Phase 2: tap matmuls back-to-back into one f32 accumulator
        # (lets v7x keep partial sums in the MRB).
        acc = jnp.zeros((cout, n), jnp.float32)
        for t in range(9):
            w_t = w_ref[k, c_idx, t][:cout, :cin]    # (Cout, Cin) static slice
            acc = acc + jnp.dot(w_t, xts[t],
                                preferred_element_type=jnp.float32)
        acc = acc + b_ref[k, c_idx][:cout, :]        # (Cout, 1) bias, lane-broadcast
        if relu:
            acc = jnp.maximum(acc, 0.0)
        if residual is not None:
            acc = acc + residual
        return acc

    f = jnp.zeros((N_PRIMAL, n), jnp.float32)
    h = jnp.zeros((N_DUAL, n), jnp.float32)

    for k in range(ITERATIONS):                      # unrolled LPD loop
        xd = jnp.concatenate([h, forward_operator(f[1:2]), g], axis=0)   # (4, n)
        mid = conv3x3(xd, k, 0, HIDDEN, relu=True)
        h_new = conv3x3(mid, k, 1, N_DUAL, residual=h)
        xp = jnp.concatenate([f, adjoint_operator(h[0:1])], axis=0)      # (3, n)
        midp = conv3x3(xp, k, 2, HIDDEN, relu=True)
        f = conv3x3(midp, k, 3, N_PRIMAL, residual=f)
        h = h_new

    o_ref[...] = f[0:1].astype(o_ref.dtype)          # (1, n) lane-dense store


# --------------------------- weight / mask packing -------------------------- #
def _pack_params(params):
    """All 8 convs -> one zero-padded weight slab + one bias slab."""
    w_slab = jnp.zeros((ITERATIONS, len(_CONVS), 9, COUT_MAX, CIN_MAX), jnp.float32)
    b_slab = jnp.zeros((ITERATIONS, len(_CONVS), COUT_MAX, 1), jnp.float32)
    for k in range(ITERATIONS):
        for c, (branch, wn, bn, cout, cin) in enumerate(_CONVS):
            w = params[branch][k][wn]                               # (Cout, Cin, 3, 3)
            w_tap = jnp.transpose(w, (2, 3, 0, 1)).reshape(9, cout, cin)
            w_slab = w_slab.at[k, c, :, :cout, :cin].set(w_tap)
            b_slab = b_slab.at[k, c, :cout, 0].set(params[branch][k][bn])
    return w_slab, b_slab


def _make_masks(batch_block):
    """(9, batch_block*HW) per-tap validity masks (zero-pad halo), tiled
    per image so a roll across the flattened image boundary is zeroed."""
    r = jnp.arange(H, dtype=jnp.int32).reshape(H, 1)
    c = jnp.arange(W, dtype=jnp.int32).reshape(1, W)
    rows = []
    for dy, dx in TAPS:
        ok = ((r + dy >= 0) & (r + dy < H) & (c + dx >= 0) & (c + dx < W))
        rows.append(jnp.tile(ok.reshape(1, HW), (1, batch_block)))
    return jnp.concatenate(rows, axis=0).astype(jnp.float32)


def _const_spec(arr):
    zeros = (0,) * arr.ndim
    return pl.BlockSpec(arr.shape, lambda b, _z=zeros: _z)   # whole array, constant block


# --------------------------------- wrapper ---------------------------------- #
def architecture_forward_pallas(params, g, *, batch_block=None):
    """Fused LPD forward: one pallas_call for the whole network."""
    B = g.shape[0]
    if batch_block is None:
        # Amortize per-grid-step overhead by blocking the batch, but keep at
        # least 2 "parallel" grid steps when B >= 2 so both v7x TensorCores
        # are used.  Pass batch_block=B for a single-step schedule (v5e/v6e).
        batch_block = -(-B // 2) if B >= 2 else 1
    nb = -(-B // batch_block)
    Bp = nb * batch_block
    n = batch_block * HW

    g_flat = g.reshape(B, HW).astype(jnp.float32)
    if Bp != B:
        g_flat = jnp.concatenate(
            [g_flat, jnp.zeros((Bp - B, HW), jnp.float32)], axis=0)
    g_blocks = g_flat.reshape(nb, 1, n)

    masks = _make_masks(batch_block)
    w_slab, b_slab = _pack_params(params)

    io_spec = pl.BlockSpec((None, 1, n), lambda b: (b, 0, 0))
    out = pl.pallas_call(
        _lpd_fused_kernel,
        grid=(nb,),
        in_specs=[io_spec, _const_spec(masks), _const_spec(w_slab),
                  _const_spec(b_slab)],
        out_specs=io_spec,
        out_shape=jax.ShapeDtypeStruct((nb, 1, n), jnp.float32),
        compiler_params=pltpu.CompilerParams(
            dimension_semantics=("parallel",)),
    )(g_blocks, masks, w_slab, b_slab)

    return out.reshape(Bp, HW)[:B].reshape(B, 1, H, W)


# ------------------------- pure-JAX reference model ------------------------- #
def conv3x3_ref(x, w, b, *, relu=False, residual=None):
    y = lax.conv_general_dilated(
        x, w, window_strides=(1, 1), padding=((1, 1), (1, 1)),
        dimension_numbers=("NCHW", "OIHW", "NCHW"))
    y = y + b[None, :, None, None]
    if relu:
        y = jnp.maximum(y, 0.0)
    if residual is not None:
        y = y + residual
    return y


def architecture_forward_ref(params, g):
    B = g.shape[0]
    f_values = jnp.zeros((B,) + PRIMAL_SHAPE, jnp.float32)
    h_values = jnp.zeros((B,) + DUAL_SHAPE, jnp.float32)
    for k in range(ITERATIONS):
        f_2 = f_values[:, 1:2]
        dp = params["dual"][k]
        xd = jnp.concatenate([h_values, forward_operator(f_2), g], axis=1)
        mid = conv3x3_ref(xd, dp["w1"], dp["b1"], relu=True)
        h_new = conv3x3_ref(mid, dp["w2"], dp["b2"], residual=h_values)
        h_1 = h_values[:, 0:1]
        pp = params["primal"][k]
        xp = jnp.concatenate([f_values, adjoint_operator(h_1)], axis=1)
        midp = conv3x3_ref(xp, pp["w1"], pp["b1"], relu=True)
        f_values = conv3x3_ref(midp, pp["w2"], pp["b2"], residual=f_values)
        h_values = h_new
    return f_values[:, 0:1, :, :]


def init_params(key):
    params = {"primal": [], "dual": []}
    for _ in range(ITERATIONS):
        key, *sub = jax.random.split(key, 9)
        params["dual"].append({
            "w1": 0.1 * jax.random.normal(sub[0], (HIDDEN, N_DUAL + 2, 3, 3), jnp.float32),
            "b1": 0.1 * jax.random.normal(sub[1], (HIDDEN,), jnp.float32),
            "w2": 0.1 * jax.random.normal(sub[2], (N_DUAL, HIDDEN, 3, 3), jnp.float32),
            "b2": 0.1 * jax.random.normal(sub[3], (N_DUAL,), jnp.float32),
        })
        params["primal"].append({
            "w1": 0.1 * jax.random.normal(sub[4], (HIDDEN, N_PRIMAL + 1, 3, 3), jnp.float32),
            "b1": 0.1 * jax.random.normal(sub[5], (HIDDEN,), jnp.float32),
            "w2": 0.1 * jax.random.normal(sub[6], (N_PRIMAL, HIDDEN, 3, 3), jnp.float32),
            "b2": 0.1 * jax.random.normal(sub[7], (N_PRIMAL,), jnp.float32),
        })
    return params


# ---------------------------------- main ----------------------------------- #
if __name__ == "__main__":
    key = jax.random.PRNGKey(0)
    kg, kp = jax.random.split(key)

    g = jax.random.normal(kg, (2, H, W), jnp.float32)
    g = g[:, None, :, :]                      # as in the reference: g = g[:, None, :, :]
    params = init_params(kp)

    ref = architecture_forward_ref(params, g)

    # Default schedule: grid=(2,), one image per step (keeps both v7x TCs busy).
    fused = jax.jit(architecture_forward_pallas)
    out = jax.block_until_ready(fused(params, g))
    assert out.shape == (2, 1, H, W), out.shape
    max_err = float(jnp.max(jnp.abs(out - ref)))
    assert jnp.allclose(out, ref, atol=1e-3, rtol=1e-3), max_err

    # Batch-blocked schedule: whole batch in one grid step (v5e/v6e preference).
    fused_blk = jax.jit(lambda p, x: architecture_forward_pallas(p, x, batch_block=2))
    out2 = jax.block_until_ready(fused_blk(params, g))
    max_err2 = float(jnp.max(jnp.abs(out2 - ref)))
    assert jnp.allclose(out2, ref, atol=1e-3, rtol=1e-3), max_err2

    print("KERNEL_OK")
</pallas_src>

<mosaic_0001>
module attributes {stable_mosaic.version = 11 : i64} {
  func.func @_lpd_fused_kernel(%arg0: i32, %arg1: memref<1x1x256xf32, #tpu.memory_space<vmem>>, %arg2: memref<9x256xf32, #tpu.memory_space<vmem>>, %arg3: memref<2x4x9x8x8xf32, #tpu.memory_space<vmem>>, %arg4: memref<2x4x8x1xf32, #tpu.memory_space<vmem>>, %arg5: memref<1x1x256xf32, #tpu.memory_space<vmem>>) attributes {dimension_semantics = [#tpu.dimension_semantics<parallel>], iteration_bounds = array<i64: 2>, scalar_prefetch = 0 : i64, scratch_operands = 0 : i64, tpu.core_type = #tpu.core_type<tc>, window_params = [{transform_indices = @transform_0, window_bounds = array<i64: 1, 1, 256>}, {pipeline_mode = #tpu.pipeline_mode<synchronous>, transform_indices = @transform_1, window_bounds = array<i64: 9, 256>}, {pipeline_mode = #tpu.pipeline_mode<synchronous>, transform_indices = @transform_2, window_bounds = array<i64: 2, 4, 9, 8, 8>}, {pipeline_mode = #tpu.pipeline_mode<synchronous>, transform_indices = @transform_3, window_bounds = array<i64: 2, 4, 8, 1>}, {transform_indices = @transform_4, window_bounds = array<i64: 1, 1, 256>}]} {
    %c0 = arith.constant 0 : index
    %c0_0 = arith.constant 0 : index
    %c0_1 = arith.constant 0 : index
    %0 = vector.load %arg1[%c0, %c0_0, %c0_1] : memref<1x1x256xf32, #tpu.memory_space<vmem>>, vector<1x1x256xf32>
    %1 = vector.shape_cast %0 : vector<1x1x256xf32> to vector<1x256xf32>
    %cst = arith.constant 0.000000e+00 : f32
    %2 = vector.broadcast %cst : f32 to vector<2x256xf32>
    %cst_2 = arith.constant 0.000000e+00 : f32
    %3 = vector.broadcast %cst_2 : f32 to vector<2x256xf32>
    %4 = vector.extract_strided_slice %2 {offsets = [1, 0], sizes = [1, 256], strides = [1, 1]} : vector<2x256xf32> to vector<1x256xf32>
    %5 = tpu.concatenate %3, %4, %1 in 0 : vector<2x256xf32>, vector<1x256xf32>, vector<1x256xf32> -> vector<4x256xf32>
    %c17_i32 = arith.constant 17 : i32
    %6 = tpu.dynamic_rotate %5 by %c17_i32 dim 1 : vector<4x256xf32>, i32 -> vector<4x256xf32>
    %c0_3 = arith.constant 0 : index
    %c0_4 = arith.constant 0 : index
    %7 = vector.load %arg2[%c0_3, %c0_4] : memref<9x256xf32, #tpu.memory_space<vmem>>, vector<1x256xf32>
    %8 = vector.broadcast %7 : vector<1x256xf32> to vector<4x256xf32>
    %9 = arith.mulf %6, %8 : vector<4x256xf32>
    %c16_i32 = arith.constant 16 : i32
    %10 = tpu.dynamic_rotate %5 by %c16_i32 dim 1 : vector<4x256xf32>, i32 -> vector<4x256xf32>
    %c1 = arith.constant 1 : index
    %c0_5 = arith.constant 0 : index
    %11 = vector.load %arg2[%c1, %c0_5] : memref<9x256xf32, #tpu.memory_space<vmem>>, vector<1x256xf32>
    %12 = vector.broadcast %11 : vector<1x256xf32> to vector<4x256xf32>
    %13 = arith.mulf %10, %12 : vector<4x256xf32>
    %c15_i32 = arith.constant 15 : i32
    %14 = tpu.dynamic_rotate %5 by %c15_i32 dim 1 : vector<4x256xf32>, i32 -> vector<4x256xf32>
    %c2 = arith.constant 2 : index
    %c0_6 = arith.constant 0 : index
    %15 = vector.load %arg2[%c2, %c0_6] : memref<9x256xf32, #tpu.memory_space<vmem>>, vector<1x256xf32>
    %16 = vector.broadcast %15 : vector<1x256xf32> to vector<4x256xf32>
    %17 = arith.mulf %14, %16 : vector<4x256xf32>
    %c1_i32 = arith.constant 1 : i32
    %18 = tpu.dynamic_rotate %5 by %c1_i32 dim 1 : vector<4x256xf32>, i32 -> vector<4x256xf32>
    %c3 = arith.constant 3 : index
    %c0_7 = arith.constant 0 : index
    %19 = vector.load %arg2[%c3, %c0_7] : memref<9x256xf32, #tpu.memory_space<vmem>>, vector<1x256xf32>
    %20 = vector.broadcast %19 : vector<1x256xf32> to vector<4x256xf32>
    %21 = arith.mulf %18, %20 : vector<4x256xf32>
    %c255_i32 = arith.constant 255 : i32
    %22 = tpu.dynamic_rotate %5 by %c255_i32 dim 1 : vector<4x256xf32>, i32 -> vector<4x256xf32>
    %c5 = arith.constant 5 : index
    %c0_8 = arith.constant 0 : index
    %23 = vector.load %arg2[%c5, %c0_8] : memref<9x256xf32, #tpu.memory_space<vmem>>, vector<1x256xf32>
    %24 = vector.broadcast %23 : vector<1x256xf32> to vector<4x256xf32>
    %25 = arith.mulf %22, %24 : vector<4x256xf32>
    %c241_i32 = arith.constant 241 : i32
    %26 = tpu.dynamic_rotate %5 by %c241_i32 dim 1 : vector<4x256xf32>, i32 -> vector<4x256xf32>
    %c6 = arith.constant 6 : index
    %c0_9 = arith.constant 0 : index
    %27 = vector.load %arg2[%c6, %c0_9] : memref<9x256xf32, #tpu.memory_space<vmem>>, vector<1x256xf32>
    %28 = vector.broadcast %27 : vector<1x256xf32> to vector<4x256xf32>
    %29 = arith.mulf %26, %28 : vector<4x256xf32>
    %c240_i32 = arith.constant 240 : i32
    %30 = tpu.dynamic_rotate %5 by %c240_i32 dim 1 : vector<4x256xf32>, i32 -> vector<4x256xf32>
    %c7 = arith.constant 7 : index
    %c0_10 = arith.constant 0 : index
    %31 = vector.load %arg2[%c7, %c0_10] : memref<9x256xf32, #tpu.memory_space<vmem>>, vector<1x256xf32>
    %32 = vector.broadcast %31 : vector<1x256xf32> to vector<4x256xf32>
    %33 = arith.mulf %30, %32 : vector<4x256xf32>
    %c239_i32 = arith.constant 239 : i32
    %34 = tpu.dynamic_rotate %5 by %c239_i32 dim 1 : vector<4x256xf32>, i32 -> vector<4x256xf32>
    %c8 = arith.constant 8 : index
    %c0_11 = arith.constant 0 : index
    %35 = vector.load %arg2[%c8, %c0_11] : memref<9x256xf32, #tpu.memory_space<vmem>>, vector<1x256xf32>
    %36 = vector.broadcast %35 : vector<1x256xf32> to vector<4x256xf32>
    %37 = arith.mulf %34, %36 : vector<4x256xf32>
    %cst_12 = arith.constant 0.000000e+00 : f32
    %38 = vector.broadcast %cst_12 : f32 to vector<8x256xf32>
    %c0_13 = arith.constant 0 : index
    %c0_14 = arith.constant 0 : index
    %c0_15 = arith.constant 0 : index
    %c0_16 = arith.constant 0 : index
    %c0_17 = arith.constant 0 : index
    %39 = vector.load %arg3[%c0_13, %c0_14, %c0_15, %c0_16, %c0_17] : memref<2x4x9x8x8xf32, #tpu.memory_space<vmem>>, vector<1x1x1x8x8xf32>
    %40 = vector.shape_cast %39 : vector<1x1x1x8x8xf32> to vector<8x8xf32>
    %41 = vector.extract_strided_slice %40 {offsets = [0, 0], sizes = [8, 4], strides = [1, 1]} : vector<8x8xf32> to vector<8x4xf32>
    %cst_18 = arith.constant dense<0.000000e+00> : vector<8x256xf32>
    %42 = tpu.matmul %41, %9, %cst_18 {dimension_numbers = #tpu.dot_dimension_numbers<[1], [0], [0], [1], [0, 0, 1, 1], [], []>} : vector<8x4xf32>, vector<4x256xf32>, vector<8x256xf32> -> vector<8x256xf32>
    %43 = arith.addf %38, %42 : vector<8x256xf32>
    %c0_19 = arith.constant 0 : index
    %c0_20 = arith.constant 0 : index
    %c1_21 = arith.constant 1 : index
    %c0_22 = arith.constant 0 : index
    %c0_23 = arith.constant 0 : index
    %44 = vector.load %arg3[%c0_19, %c0_20, %c1_21, %c0_22, %c0_23] : memref<2x4x9x8x8xf32, #tpu.memory_space<vmem>>, vector<1x1x1x8x8xf32>
    %45 = vector.shape_cast %44 : vector<1x1x1x8x8xf32> to vector<8x8xf32>
    %46 = vector.extract_strided_slice %45 {offsets = [0, 0], sizes = [8, 4], strides = [1, 1]} : vector<8x8xf32> to vector<8x4xf32>
    %cst_24 = arith.constant dense<0.000000e+00> : vector<8x256xf32>
    %47 = tpu.matmul %46, %13, %cst_24 {dimension_numbers = #tpu.dot_dimension_numbers<[1], [0], [0], [1], [0, 0, 1, 1], [], []>} : vector<8x4xf32>, vector<4x256xf32>, vector<8x256xf32> -> vector<8x256xf32>
    %48 = arith.addf %43, %47 : vector<8x256xf32>
    %c0_25 = arith.constant 0 : index
    %c0_26 = arith.constant 0 : index
    %c2_27 = arith.constant 2 : index
    %c0_28 = arith.constant 0 : index
    %c0_29 = arith.constant 0 : index
    %49 = vector.load %arg3[%c0_25, %c0_26, %c2_27, %c0_28, %c0_29] : memref<2x4x9x8x8xf32, #tpu.memory_space<vmem>>, vector<1x1x1x8x8xf32>
    %50 = vector.shape_cast %49 : vector<1x1x1x8x8xf32> to vector<8x8xf32>
    %51 = vector.extract_strided_slice %50 {offsets = [0, 0], sizes = [8, 4], strides = [1, 1]} : vector<8x8xf32> to vector<8x4xf32>
    %cst_30 = arith.constant dense<0.000000e+00> : vector<8x256xf32>
    %52 = tpu.matmul %51, %17, %cst_30 {dimension_numbers = #tpu.dot_dimension_numbers<[1], [0], [0], [1], [0, 0, 1, 1], [], []>} : vector<8x4xf32>, vector<4x256xf32>, vector<8x256xf32> -> vector<8x256xf32>
    %53 = arith.addf %48, %52 : vector<8x256xf32>
    %c0_31 = arith.constant 0 : index
    %c0_32 = arith.constant 0 : index
    %c3_33 = arith.constant 3 : index
    %c0_34 = arith.constant 0 : index
    %c0_35 = arith.constant 0 : index
    %54 = vector.load %arg3[%c0_31, %c0_32, %c3_33, %c0_34, %c0_35] : memref<2x4x9x8x8xf32, #tpu.memory_space<vmem>>, vector<1x1x1x8x8xf32>
    %55 = vector.shape_cast %54 : vector<1x1x1x8x8xf32> to vector<8x8xf32>
    %56 = vector.extract_strided_slice %55 {offsets = [0, 0], sizes = [8, 4], strides = [1, 1]} : vector<8x8xf32> to vector<8x4xf32>
    %cst_36 = arith.constant dense<0.000000e+00> : vector<8x256xf32>
    %57 = tpu.matmul %56, %21, %cst_36 {dimension_numbers = #tpu.dot_dimension_numbers<[1], [0], [0], [1], [0, 0, 1, 1], [], []>} : vector<8x4xf32>, vector<4x256xf32>, vector<8x256xf32> -> vector<8x256xf32>
    %58 = arith.addf %53, %57 : vector<8x256xf32>
    %c0_37 = arith.constant 0 : index
    %c0_38 = arith.constant 0 : index
    %c4 = arith.constant 4 : index
    %c0_39 = arith.constant 0 : index
    %c0_40 = arith.constant 0 : index
    %59 = vector.load %arg3[%c0_37, %c0_38, %c4, %c0_39, %c0_40] : memref<2x4x9x8x8xf32, #tpu.memory_space<vmem>>, vector<1x1x1x8x8xf32>
    %60 = vector.shape_cast %59 : vector<1x1x1x8x8xf32> to vector<8x8xf32>
    %61 = vector.extract_strided_slice %60 {offsets = [0, 0], sizes = [8, 4], strides = [1, 1]} : vector<8x8xf32> to vector<8x4xf32>
    %cst_41 = arith.constant dense<0.000000e+00> : vector<8x256xf32>
    %62 = tpu.matmul %61, %5, %cst_41 {dimension_numbers = #tpu.dot_dimension_numbers<[1], [0], [0], [1], [0, 0, 1, 1], [], []>} : vector<8x4xf32>, vector<4x256xf32>, vector<8x256xf32> -> vector<8x256xf32>
    %63 = arith.addf %58, %62 : vector<8x256xf32>
    %c0_42 = arith.constant 0 : index
    %c0_43 = arith.constant 0 : index
    %c5_44 = arith.constant 5 : index
    %c0_45 = arith.constant 0 : index
    %c0_46 = arith.constant 0 : index
    %64 = vector.load %arg3[%c0_42, %c0_43, %c5_44, %c0_45, %c0_46] : memref<2x4x9x8x8xf32, #tpu.memory_space<vmem>>, vector<1x1x1x8x8xf32>
    %65 = vector.shape_cast %64 : vector<1x1x1x8x8xf32> to vector<8x8xf32>
    %66 = vector.extract_strided_slice %65 {offsets = [0, 0], sizes = [8, 4], strides = [1, 1]} : vector<8x8xf32> to vector<8x4xf32>
    %cst_47 = arith.constant dense<0.000000e+00> : vector<8x256xf32>
    %67 = tpu.matmul %66, %25, %cst_47 {dimension_numbers = #tpu.dot_dimension_numbers<[1], [0], [0], [1], [0, 0, 1, 1], [], []>} : vector<8x4xf32>, vector<4x256xf32>, vector<8x256xf32> -> vector<8x256xf32>
    %68 = arith.addf %63, %67 : vector<8x256xf32>
    %c0_48 = arith.constant 0 : index
    %c0_49 = arith.constant 0 : index
    %c6_50 = arith.constant 6 : index
    %c0_51 = arith.constant 0 : index
    %c0_52 = arith.constant 0 : index
    %69 = vector.load %arg3[%c0_48, %c0_49, %c6_50, %c0_51, %c0_52] : memref<2x4x9x8x8xf32, #tpu.memory_space<vmem>>, vector<1x1x1x8x8xf32>
    %70 = vector.shape_cast %69 : vector<1x1x1x8x8xf32> to vector<8x8xf32>
    %71 = vector.extract_strided_slice %70 {offsets = [0, 0], sizes = [8, 4], strides = [1, 1]} : vector<8x8xf32> to vector<8x4xf32>
    %cst_53 = arith.constant dense<0.000000e+00> : vector<8x256xf32>
    %72 = tpu.matmul %71, %29, %cst_53 {dimension_numbers = #tpu.dot_dimension_numbers<[1], [0], [0], [1], [0, 0, 1, 1], [], []>} : vector<8x4xf32>, vector<4x256xf32>, vector<8x256xf32> -> vector<8x256xf32>
    %73 = arith.addf %68, %72 : vector<8x256xf32>
    %c0_54 = arith.constant 0 : index
    %c0_55 = arith.constant 0 : index
    %c7_56 = arith.constant 7 : index
    %c0_57 = arith.constant 0 : index
    %c0_58 = arith.constant 0 : index
    %74 = vector.load %arg3[%c0_54, %c0_55, %c7_56, %c0_57, %c0_58] : memref<2x4x9x8x8xf32, #tpu.memory_space<vmem>>, vector<1x1x1x8x8xf32>
    %75 = vector.shape_cast %74 : vector<1x1x1x8x8xf32> to vector<8x8xf32>
    %76 = vector.extract_strided_slice %75 {offsets = [0, 0], sizes = [8, 4], strides = [1, 1]} : vector<8x8xf32> to vector<8x4xf32>
    %cst_59 = arith.constant dense<0.000000e+00> : vector<8x256xf32>
    %77 = tpu.matmul %76, %33, %cst_59 {dimension_numbers = #tpu.dot_dimension_numbers<[1], [0], [0], [1], [0, 0, 1, 1], [], []>} : vector<8x4xf32>, vector<4x256xf32>, vector<8x256xf32> -> vector<8x256xf32>
    %78 = arith.addf %73, %77 : vector<8x256xf32>
    %c0_60 = arith.constant 0 : index
    %c0_61 = arith.constant 0 : index
    %c8_62 = arith.constant 8 : index
    %c0_63 = arith.constant 0 : index
    %c0_64 = arith.constant 0 : index
    %79 = vector.load %arg3[%c0_60, %c0_61, %c8_62, %c0_63, %c0_64] : memref<2x4x9x8x8xf32, #tpu.memory_space<vmem>>, vector<1x1x1x8x8xf32>
    %80 = vector.shape_cast %79 : vector<1x1x1x8x8xf32> to vector<8x8xf32>
    %81 = vector.extract_strided_slice %80 {offsets = [0, 0], sizes = [8, 4], strides = [1, 1]} : vector<8x8xf32> to vector<8x4xf32>
    %cst_65 = arith.constant dense<0.000000e+00> : vector<8x256xf32>
    %82 = tpu.matmul %81, %37, %cst_65 {dimension_numbers = #tpu.dot_dimension_numbers<[1], [0], [0], [1], [0, 0, 1, 1], [], []>} : vector<8x4xf32>, vector<4x256xf32>, vector<8x256xf32> -> vector<8x256xf32>
    %83 = arith.addf %78, %82 : vector<8x256xf32>
    %c0_66 = arith.constant 0 : index
    %c0_67 = arith.constant 0 : index
    %c0_68 = arith.constant 0 : index
    %c0_69 = arith.constant 0 : index
    %84 = vector.load %arg4[%c0_66, %c0_67, %c0_68, %c0_69] : memref<2x4x8x1xf32, #tpu.memory_space<vmem>>, vector<1x1x8x1xf32>
    %85 = vector.shape_cast %84 : vector<1x1x8x1xf32> to vector<8x1xf32>
    %86 = vector.broadcast %85 : vector<8x1xf32> to vector<8x256xf32>
    %87 = arith.addf %83, %86 : vector<8x256xf32>
    %cst_70 = arith.constant 0.000000e+00 : f32
    %88 = vector.broadcast %cst_70 : f32 to vector<8x256xf32>
    %89 = arith.maximumf %87, %88 : vector<8x256xf32>
    %c17_i32_71 = arith.constant 17 : i32
    %90 = tpu.dynamic_rotate %89 by %c17_i32_71 dim 1 : vector<8x256xf32>, i32 -> vector<8x256xf32>
    %c0_72 = arith.constant 0 : index
    %c0_73 = arith.constant 0 : index
    %91 = vector.load %arg2[%c0_72, %c0_73] : memref<9x256xf32, #tpu.memory_space<vmem>>, vector<1x256xf32>
    %92 = vector.broadcast %91 : vector<1x256xf32> to vector<8x256xf32>
    %93 = arith.mulf %90, %92 : vector<8x256xf32>
    %c16_i32_74 = arith.constant 16 : i32
    %94 = tpu.dynamic_rotate %89 by %c16_i32_74 dim 1 : vector<8x256xf32>, i32 -> vector<8x256xf32>
    %c1_75 = arith.constant 1 : index
    %c0_76 = arith.constant 0 : index
    %95 = vector.load %arg2[%c1_75, %c0_76] : memref<9x256xf32, #tpu.memory_space<vmem>>, vector<1x256xf32>
    %96 = vector.broadcast %95 : vector<1x256xf32> to vector<8x256xf32>
    %97 = arith.mulf %94, %96 : vector<8x256xf32>
    %c15_i32_77 = arith.constant 15 : i32
    %98 = tpu.dynamic_rotate %89 by %c15_i32_77 dim 1 : vector<8x256xf32>, i32 -> vector<8x256xf32>
    %c2_78 = arith.constant 2 : index
    %c0_79 = arith.constant 0 : index
    %99 = vector.load %arg2[%c2_78, %c0_79] : memref<9x256xf32, #tpu.memory_space<vmem>>, vector<1x256xf32>
    %100 = vector.broadcast %99 : vector<1x256xf32> to vector<8x256xf32>
    %101 = arith.mulf %98, %100 : vector<8x256xf32>
    %c1_i32_80 = arith.constant 1 : i32
    %102 = tpu.dynamic_rotate %89 by %c1_i32_80 dim 1 : vector<8x256xf32>, i32 -> vector<8x256xf32>
    %c3_81 = arith.constant 3 : index
    %c0_82 = arith.constant 0 : index
    %103 = vector.load %arg2[%c3_81, %c0_82] : memref<9x256xf32, #tpu.memory_space<vmem>>, vector<1x256xf32>
    %104 = vector.broadcast %103 : vector<1x256xf32> to vector<8x256xf32>
    %105 = arith.mulf %102, %104 : vector<8x256xf32>
    %c255_i32_83 = arith.constant 255 : i32
    %106 = tpu.dynamic_rotate %89 by %c255_i32_83 dim 1 : vector<8x256xf32>, i32 -> vector<8x256xf32>
    %c5_84 = arith.constant 5 : index
    %c0_85 = arith.constant 0 : index
    %107 = vector.load %arg2[%c5_84, %c0_85] : memref<9x256xf32, #tpu.memory_space<vmem>>, vector<1x256xf32>
    %108 = vector.broadcast %107 : vector<1x256xf32> to vector<8x256xf32>
    %109 = arith.mulf %106, %108 : vector<8x256xf32>
    %c241_i32_86 = arith.constant 241 : i32
    %110 = tpu.dynamic_rotate %89 by %c241_i32_86 dim 1 : vector<8x256xf32>, i32 -> vector<8x256xf32>
    %c6_87 = arith.constant 6 : index
    %c0_88 = arith.constant 0 : index
    %111 = vector.load %arg2[%c6_87, %c0_88] : memref<9x256xf32, #tpu.memory_space<vmem>>, vector<1x256xf32>
    %112 = vector.broadcast %111 : vector<1x256xf32> to vector<8x256xf32>
    %113 = arith.mulf %110, %112 : vector<8x256xf32>
    %c240_i32_89 = arith.constant 240 : i32
    %114 = tpu.dynamic_rotate %89 by %c240_i32_89 dim 1 : vector<8x256xf32>, i32 -> vector<8x256xf32>
    %c7_90 = arith.constant 7 : index
    %c0_91 = arith.constant 0 : index
    %115 = vector.load %arg2[%c7_90, %c0_91] : memref<9x256xf32, #tpu.memory_space<vmem>>, vector<1x256xf32>
    %116 = vector.broadcast %115 : vector<1x256xf32> to vector<8x256xf32>
    %117 = arith.mulf %114, %116 : vector<8x256xf32>
    %c239_i32_92 = arith.constant 239 : i32
    %118 = tpu.dynamic_rotate %89 by %c239_i32_92 dim 1 : vector<8x256xf32>, i32 -> vector<8x256xf32>
    %c8_93 = arith.constant 8 : index
    %c0_94 = arith.constant 0 : index
    %119 = vector.load %arg2[%c8_93, %c0_94] : memref<9x256xf32, #tpu.memory_space<vmem>>, vector<1x256xf32>
    %120 = vector.broadcast %119 : vector<1x256xf32> to vector<8x256xf32>
    %121 = arith.mulf %118, %120 : vector<8x256xf32>
    %cst_95 = arith.constant 0.000000e+00 : f32
    %122 = vector.broadcast %cst_95 : f32 to vector<2x256xf32>
    %c0_96 = arith.constant 0 : index
    %c1_97 = arith.constant 1 : index
    %c0_98 = arith.constant 0 : index
    %c0_99 = arith.constant 0 : index
    %c0_100 = arith.constant 0 : index
    %123 = vector.load %arg3[%c0_96, %c1_97, %c0_98, %c0_99, %c0_100] : memref<2x4x9x8x8xf32, #tpu.memory_space<vmem>>, vector<1x1x1x8x8xf32>
    %124 = vector.shape_cast %123 : vector<1x1x1x8x8xf32> to vector<8x8xf32>
    %125 = vector.extract_strided_slice %124 {offsets = [0, 0], sizes = [2, 8], strides = [1, 1]} : vector<8x8xf32> to vector<2x8xf32>
    %cst_101 = arith.constant dense<0.000000e+00> : vector<2x256xf32>
    %126 = tpu.matmul %125, %93, %cst_101 {dimension_numbers = #tpu.dot_dimension_numbers<[1], [0], [0], [1], [0, 0, 1, 1], [], []>} : vector<2x8xf32>, vector<8x256xf32>, vector<2x256xf32> -> vector<2x256xf32>
    %127 = arith.addf %122, %126 : vector<2x256xf32>
    %c0_102 = arith.constant 0 : index
    %c1_103 = arith.constant 1 : index
    %c1_104 = arith.constant 1 : index
    %c0_105 = arith.constant 0 : index
    %c0_106 = arith.constant 0 : index
    %128 = vector.load %arg3[%c0_102, %c1_103, %c1_104, %c0_105, %c0_106] : memref<2x4x9x8x8xf32, #tpu.memory_space<vmem>>, vector<1x1x1x8x8xf32>
    %129 = vector.shape_cast %128 : vector<1x1x1x8x8xf32> to vector<8x8xf32>
    %130 = vector.extract_strided_slice %129 {offsets = [0, 0], sizes = [2, 8], strides = [1, 1]} : vector<8x8xf32> to vector<2x8xf32>
    %cst_107 = arith.constant dense<0.000000e+00> : vector<2x256xf32>
    %131 = tpu.matmul %130, %97, %cst_107 {dimension_numbers = #tpu.dot_dimension_numbers<[1], [0], [0], [1], [0, 0, 1, 1], [], []>} : vector<2x8xf32>, vector<8x256xf32>, vector<2x256xf32> -> vector<2x256xf32>
    %132 = arith.addf %127, %131 : vector<2x256xf32>
    %c0_108 = arith.constant 0 : index
    %c1_109 = arith.constant 1 : index
    %c2_110 = arith.constant 2 : index
    %c0_111 = arith.constant 0 : index
    %c0_112 = arith.constant 0 : index
    %133 = vector.load %arg3[%c0_108, %c1_109, %c2_110, %c0_111, %c0_112] : memref<2x4x9x8x8xf32, #tpu.memory_space<vmem>>, vector<1x1x1x8x8xf32>
    %134 = vector.shape_cast %133 : vector<1x1x1x8x8xf32> to vector<8x8xf32>
    %135 = vector.extract_strided_slice %134 {offsets = [0, 0], sizes = [2, 8], strides = [1, 1]} : vector<8x8xf32> to vector<2x8xf32>
    %cst_113 = arith.constant dense<0.000000e+00> : vector<2x256xf32>
    %136 = tpu.matmul %135, %101, %cst_113 {dimension_numbers = #tpu.dot_dimension_numbers<[1], [0], [0], [1], [0, 0, 1, 1], [], []>} : vector<2x8xf32>, vector<8x256xf32>, vector<2x256xf32> -> vector<2x256xf32>
    %137 = arith.addf %132, %136 : vector<2x256xf32>
    %c0_114 = arith.constant 0 : index
    %c1_115 = arith.constant 1 : index
    %c3_116 = arith.constant 3 : index
    %c0_117 = arith.constant 0 : index
    %c0_118 = arith.constant 0 : index
    %138 = vector.load %arg3[%c0_114, %c1_115, %c3_116, %c0_117, %c0_118] : memref<2x4x9x8x8xf32, #tpu.memory_space<vmem>>, vector<1x1x1x8x8xf32>
    %139 = vector.shape_cast %138 : vector<1x1x1x8x8xf32> to vector<8x8xf32>
    %140 = vector.extract_strided_slice %139 {offsets = [0, 0], sizes = [2, 8], strides = [1, 1]} : vector<8x8xf32> to vector<2x8xf32>
    %cst_119 = arith.constant dense<0.000000e+00> : vector<2x256xf32>
    %141 = tpu.matmul %140, %105, %cst_119 {dimension_numbers = #tpu.dot_dimension_numbers<[1], [0], [0], [1], [0, 0, 1, 1], [], []>} : vector<2x8xf32>, vector<8x256xf32>, vector<2x256xf32> -> vector<2x256xf32>
    %142 = arith.addf %137, %141 : vector<2x256xf32>
    %c0_120 = arith.constant 0 : index
    %c1_121 = arith.constant 1 : index
    %c4_122 = arith.constant 4 : index
    %c0_123 = arith.constant 0 : index
    %c0_124 = arith.constant 0 : index
    %143 = vector.load %arg3[%c0_120, %c1_121, %c4_122, %c0_123, %c0_124] : memref<2x4x9x8x8xf32, #tpu.memory_space<vmem>>, vector<1x1x1x8x8xf32>
    %144 = vector.shape_cast %143 : vector<1x1x1x8x8xf32> to vector<8x8xf32>
    %145 = vector.extract_strided_slice %144 {offsets = [0, 0], sizes = [2, 8], strides = [1, 1]} : vector<8x8xf32> to vector<2x8xf32>
    %cst_125 = arith.constant dense<0.000000e+00> : vector<2x256xf32>
    %146 = tpu.matmul %145, %89, %cst_125 {dimension_numbers = #tpu.dot_dimension_numbers<[1], [0], [0], [1], [0, 0, 1, 1], [], []>} : vector<2x8xf32>, vector<8x256xf32>, vector<2x256xf32> -> vector<2x256xf32>
    %147 = arith.addf %142, %146 : vector<2x256xf32>
    %c0_126 = arith.constant 0 : index
    %c1_127 = arith.constant 1 : index
    %c5_128 = arith.constant 5 : index
    %c0_129 = arith.constant 0 : index
    %c0_130 = arith.constant 0 : index
    %148 = vector.load %arg3[%c0_126, %c1_127, %c5_128, %c0_129, %c0_130] : memref<2x4x9x8x8xf32, #tpu.memory_space<vmem>>, vector<1x1x1x8x8xf32>
    %149 = vector.shape_cast %148 : vector<1x1x1x8x8xf32> to vector<8x8xf32>
    %150 = vector.extract_strided_slice %149 {offsets = [0, 0], sizes = [2, 8], strides = [1, 1]} : vector<8x8xf32> to vector<2x8xf32>
    %cst_131 = arith.constant dense<0.000000e+00> : vector<2x256xf32>
    %151 = tpu.matmul %150, %109, %cst_131 {dimension_numbers = #tpu.dot_dimension_numbers<[1], [0], [0], [1], [0, 0, 1, 1], [], []>} : vector<2x8xf32>, vector<8x256xf32>, vector<2x256xf32> -> vector<2x256xf32>
    %152 = arith.addf %147, %151 : vector<2x256xf32>
    %c0_132 = arith.constant 0 : index
    %c1_133 = arith.constant 1 : index
    %c6_134 = arith.constant 6 : index
    %c0_135 = arith.constant 0 : index
    %c0_136 = arith.constant 0 : index
    %153 = vector.load %arg3[%c0_132, %c1_133, %c6_134, %c0_135, %c0_136] : memref<2x4x9x8x8xf32, #tpu.memory_space<vmem>>, vector<1x1x1x8x8xf32>
    %154 = vector.shape_cast %153 : vector<1x1x1x8x8xf32> to vector<8x8xf32>
    %155 = vector.extract_strided_slice %154 {offsets = [0, 0], sizes = [2, 8], strides = [1, 1]} : vector<8x8xf32> to vector<2x8xf32>
    %cst_137 = arith.constant dense<0.000000e+00> : vector<2x256xf32>
    %156 = tpu.matmul %155, %113, %cst_137 {dimension_numbers = #tpu.dot_dimension_numbers<[1], [0], [0], [1], [0, 0, 1, 1], [], []>} : vector<2x8xf32>, vector<8x256xf32>, vector<2x256xf32> -> vector<2x256xf32>
    %157 = arith.addf %152, %156 : vector<2x256xf32>
    %c0_138 = arith.constant 0 : index
    %c1_139 = arith.constant 1 : index
    %c7_140 = arith.constant 7 : index
    %c0_141 = arith.constant 0 : index
    %c0_142 = arith.constant 0 : index
    %158 = vector.load %arg3[%c0_138, %c1_139, %c7_140, %c0_141, %c0_142] : memref<2x4x9x8x8xf32, #tpu.memory_space<vmem>>, vector<1x1x1x8x8xf32>
    %159 = vector.shape_cast %158 : vector<1x1x1x8x8xf32> to vector<8x8xf32>
    %160 = vector.extract_strided_slice %159 {offsets = [0, 0], sizes = [2, 8], strides = [1, 1]} : vector<8x8xf32> to vector<2x8xf32>
    %cst_143 = arith.constant dense<0.000000e+00> : vector<2x256xf32>
    %161 = tpu.matmul %160, %117, %cst_143 {dimension_numbers = #tpu.dot_dimension_numbers<[1], [0], [0], [1], [0, 0, 1, 1], [], []>} : vector<2x8xf32>, vector<8x256xf32>, vector<2x256xf32> -> vector<2x256xf32>
    %162 = arith.addf %157, %161 : vector<2x256xf32>
    %c0_144 = arith.constant 0 : index
    %c1_145 = arith.constant 1 : index
    %c8_146 = arith.constant 8 : index
    %c0_147 = arith.constant 0 : index
    %c0_148 = arith.constant 0 : index
    %163 = vector.load %arg3[%c0_144, %c1_145, %c8_146, %c0_147, %c0_148] : memref<2x4x9x8x8xf32, #tpu.memory_space<vmem>>, vector<1x1x1x8x8xf32>
    %164 = vector.shape_cast %163 : vector<1x1x1x8x8xf32> to vector<8x8xf32>
    %165 = vector.extract_strided_slice %164 {offsets = [0, 0], sizes = [2, 8], strides = [1, 1]} : vector<8x8xf32> to vector<2x8xf32>
    %cst_149 = arith.constant dense<0.000000e+00> : vector<2x256xf32>
    %166 = tpu.matmul %165, %121, %cst_149 {dimension_numbers = #tpu.dot_dimension_numbers<[1], [0], [0], [1], [0, 0, 1, 1], [], []>} : vector<2x8xf32>, vector<8x256xf32>, vector<2x256xf32> -> vector<2x256xf32>
    %167 = arith.addf %162, %166 : vector<2x256xf32>
    %c0_150 = arith.constant 0 : index
    %c1_151 = arith.constant 1 : index
    %c0_152 = arith.constant 0 : index
    %c0_153 = arith.constant 0 : index
    %168 = vector.load %arg4[%c0_150, %c1_151, %c0_152, %c0_153] : memref<2x4x8x1xf32, #tpu.memory_space<vmem>>, vector<1x1x8x1xf32>
    %169 = vector.shape_cast %168 : vector<1x1x8x1xf32> to vector<8x1xf32>
    %170 = vector.extract_strided_slice %169 {offsets = [0, 0], sizes = [2, 1], strides = [1, 1]} : vector<8x1xf32> to vector<2x1xf32>
    %171 = vector.broadcast %170 : vector<2x1xf32> to vector<2x256xf32>
    %172 = arith.addf %167, %171 : vector<2x256xf32>
    %173 = arith.addf %172, %3 : vector<2x256xf32>
    %174 = vector.extract_strided_slice %3 {offsets = [0, 0], sizes = [1, 256], strides = [1, 1]} : vector<2x256xf32> to vector<1x256xf32>
    %175 = tpu.concatenate %2, %174 in 0 : vector<2x256xf32>, vector<1x256xf32> -> vector<3x256xf32>
    %c17_i32_154 = arith.constant 17 : i32
    %176 = tpu.dynamic_rotate %175 by %c17_i32_154 dim 1 : vector<3x256xf32>, i32 -> vector<3x256xf32>
    %c0_155 = arith.constant 0 : index
    %c0_156 = arith.constant 0 : index
    %177 = vector.load %arg2[%c0_155, %c0_156] : memref<9x256xf32, #tpu.memory_space<vmem>>, vector<1x256xf32>
    %178 = vector.broadcast %177 : vector<1x256xf32> to vector<3x256xf32>
    %179 = arith.mulf %176, %178 : vector<3x256xf32>
    %c16_i32_157 = arith.constant 16 : i32
    %180 = tpu.dynamic_rotate %175 by %c16_i32_157 dim 1 : vector<3x256xf32>, i32 -> vector<3x256xf32>
    %c1_158 = arith.constant 1 : index
    %c0_159 = arith.constant 0 : index
    %181 = vector.load %arg2[%c1_158, %c0_159] : memref<9x256xf32, #tpu.memory_space<vmem>>, vector<1x256xf32>
    %182 = vector.broadcast %181 : vector<1x256xf32> to vector<3x256xf32>
    %183 = arith.mulf %180, %182 : vector<3x256xf32>
    %c15_i32_160 = arith.constant 15 : i32
    %184 = tpu.dynamic_rotate %175 by %c15_i32_160 dim 1 : vector<3x256xf32>, i32 -> vector<3x256xf32>
    %c2_161 = arith.constant 2 : index
    %c0_162 = arith.constant 0 : index
    %185 = vector.load %arg2[%c2_161, %c0_162] : memref<9x256xf32, #tpu.memory_space<vmem>>, vector<1x256xf32>
    %186 = vector.broadcast %185 : vector<1x256xf32> to vector<3x256xf32>
    %187 = arith.mulf %184, %186 : vector<3x256xf32>
    %c1_i32_163 = arith.constant 1 : i32
    %188 = tpu.dynamic_rotate %175 by %c1_i32_163 dim 1 : vector<3x256xf32>, i32 -> vector<3x256xf32>
    %c3_164 = arith.constant 3 : index
    %c0_165 = arith.constant 0 : index
    %189 = vector.load %arg2[%c3_164, %c0_165] : memref<9x256xf32, #tpu.memory_space<vmem>>, vector<1x256xf32>
    %190 = vector.broadcast %189 : vector<1x256xf32> to vector<3x256xf32>
    %191 = arith.mulf %188, %190 : vector<3x256xf32>
    %c255_i32_166 = arith.constant 255 : i32
    %192 = tpu.dynamic_rotate %175 by %c255_i32_166 dim 1 : vector<3x256xf32>, i32 -> vector<3x256xf32>
    %c5_167 = arith.constant 5 : index
    %c0_168 = arith.constant 0 : index
    %193 = vector.load %arg2[%c5_167, %c0_168] : memref<9x256xf32, #tpu.memory_space<vmem>>, vector<1x256xf32>
    %194 = vector.broadcast %193 : vector<1x256xf32> to vector<3x256xf32>
    %195 = arith.mulf %192, %194 : vector<3x256xf32>
    %c241_i32_169 = arith.constant 241 : i32
    %196 = tpu.dynamic_rotate %175 by %c241_i32_169 dim 1 : vector<3x256xf32>, i32 -> vector<3x256xf32>
    %c6_170 = arith.constant 6 : index
    %c0_171 = arith.constant 0 : index
    %197 = vector.load %arg2[%c6_170, %c0_171] : memref<9x256xf32, #tpu.memory_space<vmem>>, vector<1x256xf32>
    %198 = vector.broadcast %197 : vector<1x256xf32> to vector<3x256xf32>
    %199 = arith.mulf %196, %198 : vector<3x256xf32>
    %c240_i32_172 = arith.constant 240 : i32
    %200 = tpu.dynamic_rotate %175 by %c240_i32_172 dim 1 : vector<3x256xf32>, i32 -> vector<3x256xf32>
    %c7_173 = arith.constant 7 : index
    %c0_174 = arith.constant 0 : index
    %201 = vector.load %arg2[%c7_173, %c0_174] : memref<9x256xf32, #tpu.memory_space<vmem>>, vector<1x256xf32>
    %202 = vector.broadcast %201 : vector<1x256xf32> to vector<3x256xf32>
    %203 = arith.mulf %200, %202 : vector<3x256xf32>
    %c239_i32_175 = arith.constant 239 : i32
    %204 = tpu.dynamic_rotate %175 by %c239_i32_175 dim 1 : vector<3x256xf32>, i32 -> vector<3x256xf32>
    %c8_176 = arith.constant 8 : index
    %c0_177 = arith.constant 0 : index
    %205 = vector.load %arg2[%c8_176, %c0_177] : memref<9x256xf32, #tpu.memory_space<vmem>>, vector<1x256xf32>
    %206 = vector.broadcast %205 : vector<1x256xf32> to vector<3x256xf32>
    %207 = arith.mulf %204, %206 : vector<3x256xf32>
    %cst_178 = arith.constant 0.000000e+00 : f32
    %208 = vector.broadcast %cst_178 : f32 to vector<8x256xf32>
    %c0_179 = arith.constant 0 : index
    %c2_180 = arith.constant 2 : index
    %c0_181 = arith.constant 0 : index
    %c0_182 = arith.constant 0 : index
    %c0_183 = arith.constant 0 : index
    %209 = vector.load %arg3[%c0_179, %c2_180, %c0_181, %c0_182, %c0_183] : memref<2x4x9x8x8xf32, #tpu.memory_space<vmem>>, vector<1x1x1x8x8xf32>
    %210 = vector.shape_cast %209 : vector<1x1x1x8x8xf32> to vector<8x8xf32>
    %211 = vector.extract_strided_slice %210 {offsets = [0, 0], sizes = [8, 3], strides = [1, 1]} : vector<8x8xf32> to vector<8x3xf32>
    %cst_184 = arith.constant dense<0.000000e+00> : vector<8x256xf32>
    %212 = tpu.matmul %211, %179, %cst_184 {dimension_numbers = #tpu.dot_dimension_numbers<[1], [0], [0], [1], [0, 0, 1, 1], [], []>} : vector<8x3xf32>, vector<3x256xf32>, vector<8x256xf32> -> vector<8x256xf32>
    %213 = arith.addf %208, %212 : vector<8x256xf32>
    %c0_185 = arith.constant 0 : index
    %c2_186 = arith.constant 2 : index
    %c1_187 = arith.constant 1 : index
    %c0_188 = arith.constant 0 : index
    %c0_189 = arith.constant 0 : index
    %214 = vector.load %arg3[%c0_185, %c2_186, %c1_187, %c0_188, %c0_189] : memref<2x4x9x8x8xf32, #tpu.memory_space<vmem>>, vector<1x1x1x8x8xf32>
    %215 = vector.shape_cast %214 : vector<1x1x1x8x8xf32> to vector<8x8xf32>
    %216 = vector.extract_strided_slice %215 {offsets = [0, 0], sizes = [8, 3], strides = [1, 1]} : vector<8x8xf32> to vector<8x3xf32>
    %cst_190 = arith.constant dense<0.000000e+00> : vector<8x256xf32>
    %217 = tpu.matmul %216, %183, %cst_190 {dimension_numbers = #tpu.dot_dimension_numbers<[1], [0], [0], [1], [0, 0, 1, 1], [], []>} : vector<8x3xf32>, vector<3x256xf32>, vector<8x256xf32> -> vector<8x256xf32>
    %218 = arith.addf %213, %217 : vector<8x256xf32>
    %c0_191 = arith.constant 0 : index
    %c2_192 = arith.constant 2 : index
    %c2_193 = arith.constant 2 : index
    %c0_194 = arith.constant 0 : index
    %c0_195 = arith.constant 0 : index
    %219 = vector.load %arg3[%c0_191, %c2_192, %c2_193, %c0_194, %c0_195] : memref<2x4x9x8x8xf32, #tpu.memory_space<vmem>>, vector<1x1x1x8x8xf32>
    %220 = vector.shape_cast %219 : vector<1x1x1x8x8xf32> to vector<8x8xf32>
    %221 = vector.extract_strided_slice %220 {offsets = [0, 0], sizes = [8, 3], strides = [1, 1]} : vector<8x8xf32> to vector<8x3xf32>
    %cst_196 = arith.constant dense<0.000000e+00> : vector<8x256xf32>
    %222 = tpu.matmul %221, %187, %cst_196 {dimension_numbers = #tpu.dot_dimension_numbers<[1], [0], [0], [1], [0, 0, 1, 1], [], []>} : vector<8x3xf32>, vector<3x256xf32>, vector<8x256xf32> -> vector<8x256xf32>
    %223 = arith.addf %218, %222 : vector<8x256xf32>
    %c0_197 = arith.constant 0 : index
    %c2_198 = arith.constant 2 : index
    %c3_199 = arith.constant 3 : index
    %c0_200 = arith.constant 0 : index
    %c0_201 = arith.constant 0 : index
    %224 = vector.load %arg3[%c0_197, %c2_198, %c3_199, %c0_200, %c0_201] : memref<2x4x9x8x8xf32, #tpu.memory_space<vmem>>, vector<1x1x1x8x8xf32>
    %225 = vector.shape_cast %224 : vector<1x1x1x8x8xf32> to vector<8x8xf32>
    %226 = vector.extract_strided_slice %225 {offsets = [0, 0], sizes = [8, 3], strides = [1, 1]} : vector<8x8xf32> to vector<8x3xf32>
    %cst_202 = arith.constant dense<0.000000e+00> : vector<8x256xf32>
    %227 = tpu.matmul %226, %191, %cst_202 {dimension_numbers = #tpu.dot_dimension_numbers<[1], [0], [0], [1], [0, 0, 1, 1], [], []>} : vector<8x3xf32>, vector<3x256xf32>, vector<8x256xf32> -> vector<8x256xf32>
    %228 = arith.addf %223, %227 : vector<8x256xf32>
    %c0_203 = arith.constant 0 : index
    %c2_204 = arith.constant 2 : index
    %c4_205 = arith.constant 4 : index
    %c0_206 = arith.constant 0 : index
    %c0_207 = arith.constant 0 : index
    %229 = vector.load %arg3[%c0_203, %c2_204, %c4_205, %c0_206, %c0_207] : memref<2x4x9x8x8xf32, #tpu.memory_space<vmem>>, vector<1x1x1x8x8xf32>
    %230 = vector.shape_cast %229 : vector<1x1x1x8x8xf32> to vector<8x8xf32>
    %231 = vector.extract_strided_slice %230 {offsets = [0, 0], sizes = [8, 3], strides = [1, 1]} : vector<8x8xf32> to vector<8x3xf32>
    %cst_208 = arith.constant dense<0.000000e+00> : vector<8x256xf32>
    %232 = tpu.matmul %231, %175, %cst_208 {dimension_numbers = #tpu.dot_dimension_numbers<[1], [0], [0], [1], [0, 0, 1, 1], [], []>} : vector<8x3xf32>, vector<3x256xf32>, vector<8x256xf32> -> vector<8x256xf32>
    %233 = arith.addf %228, %232 : vector<8x256xf32>
    %c0_209 = arith.constant 0 : index
    %c2_210 = arith.constant 2 : index
    %c5_211 = arith.constant 5 : index
    %c0_212 = arith.constant 0 : index
    %c0_213 = arith.constant 0 : index
    %234 = vector.load %arg3[%c0_209, %c2_210, %c5_211, %c0_212, %c0_213] : memref<2x4x9x8x8xf32, #tpu.memory_space<vmem>>, vector<1x1x1x8x8xf32>
    %235 = vector.shape_cast %234 : vector<1x1x1x8x8xf32> to vector<8x8xf32>
    %236 = vector.extract_strided_slice %235 {offsets = [0, 0], sizes = [8, 3], strides = [1, 1]} : vector<8x8xf32> to vector<8x3xf32>
    %cst_214 = arith.constant dense<0.000000e+00> : vector<8x256xf32>
    %237 = tpu.matmul %236, %195, %cst_214 {dimension_numbers = #tpu.dot_dimension_numbers<[1], [0], [0], [1], [0, 0, 1, 1], [], []>} : vector<8x3xf32>, vector<3x256xf32>, vector<8x256xf32> -> vector<8x256xf32>
    %238 = arith.addf %233, %237 : vector<8x256xf32>
    %c0_215 = arith.constant 0 : index
    %c2_216 = arith.constant 2 : index
    %c6_217 = arith.constant 6 : index
    %c0_218 = arith.constant 0 : index
    %c0_219 = arith.constant 0 : index
    %239 = vector.load %arg3[%c0_215, %c2_216, %c6_217, %c0_218, %c0_219] : memref<2x4x9x8x8xf32, #tpu.memory_space<vmem>>, vector<1x1x1x8x8xf32>
    %240 = vector.shape_cast %239 : vector<1x1x1x8x8xf32> to vector<8x8xf32>
    %241 = vector.extract_strided_slice %240 {offsets = [0, 0], sizes = [8, 3], strides = [1, 1]} : vector<8x8xf32> to vector<8x3xf32>
    %cst_220 = arith.constant dense<0.000000e+00> : vector<8x256xf32>
    %242 = tpu.matmul %241, %199, %cst_220 {dimension_numbers = #tpu.dot_dimension_numbers<[1], [0], [0], [1], [0, 0, 1, 1], [], []>} : vector<8x3xf32>, vector<3x256xf32>, vector<8x256xf32> -> vector<8x256xf32>
    %243 = arith.addf %238, %242 : vector<8x256xf32>
    %c0_221 = arith.constant 0 : index
    %c2_222 = arith.constant 2 : index
    %c7_223 = arith.constant 7 : index
    %c0_224 = arith.constant 0 : index
    %c0_225 = arith.constant 0 : index
    %244 = vector.load %arg3[%c0_221, %c2_222, %c7_223, %c0_224, %c0_225] : memref<2x4x9x8x8xf32, #tpu.memory_space<vmem>>, vector<1x1x1x8x8xf32>
    %245 = vector.shape_cast %244 : vector<1x1x1x8x8xf32> to vector<8x8xf32>
    %246 = vector.extract_strided_slice %245 {offsets = [0, 0], sizes = [8, 3], strides = [1, 1]} : vector<8x8xf32> to vector<8x3xf32>
    %cst_226 = arith.constant dense<0.000000e+00> : vector<8x256xf32>
    %247 = tpu.matmul %246, %203, %cst_226 {dimension_numbers = #tpu.dot_dimension_numbers<[1], [0], [0], [1], [0, 0, 1, 1], [], []>} : vector<8x3xf32>, vector<3x256xf32>, vector<8x256xf32> -> vector<8x256xf32>
    %248 = arith.addf %243, %247 : vector<8x256xf32>
    %c0_227 = arith.constant 0 : index
    %c2_228 = arith.constant 2 : index
    %c8_229 = arith.constant 8 : index
    %c0_230 = arith.constant 0 : index
    %c0_231 = arith.constant 0 : index
    %249 = vector.load %arg3[%c0_227, %c2_228, %c8_229, %c0_230, %c0_231] : memref<2x4x9x8x8xf32, #tpu.memory_space<vmem>>, vector<1x1x1x8x8xf32>
    %250 = vector.shape_cast %249 : vector<1x1x1x8x8xf32> to vector<8x8xf32>
    %251 = vector.extract_strided_slice %250 {offsets = [0, 0], sizes = [8, 3], strides = [1, 1]} : vector<8x8xf32> to vector<8x3xf32>
    %cst_232 = arith.constant dense<0.000000e+00> : vector<8x256xf32>
    %252 = tpu.matmul %251, %207, %cst_232 {dimension_numbers = #tpu.dot_dimension_numbers<[1], [0], [0], [1], [0, 0, 1, 1], [], []>} : vector<8x3xf32>, vector<3x256xf32>, vector<8x256xf32> -> vector<8x256xf32>
    %253 = arith.addf %248, %252 : vector<8x256xf32>
    %c0_233 = arith.constant 0 : index
    %c2_234 = arith.constant 2 : index
    %c0_235 = arith.constant 0 : index
    %c0_236 = arith.constant 0 : index
    %254 = vector.load %arg4[%c0_233, %c2_234, %c0_235, %c0_236] : memref<2x4x8x1xf32, #tpu.memory_space<vmem>>, vector<1x1x8x1xf32>
    %255 = vector.shape_cast %254 : vector<1x1x8x1xf32> to vector<8x1xf32>
    %256 = vector.broadcast %255 : vector<8x1xf32> to vector<8x256xf32>
    %257 = arith.addf %253, %256 : vector<8x256xf32>
    %cst_237 = arith.constant 0.000000e+00 : f32
    %258 = vector.broadcast %cst_237 : f32 to vector<8x256xf32>
    %259 = arith.maximumf %257, %258 : vector<8x256xf32>
    %c17_i32_238 = arith.constant 17 : i32
    %260 = tpu.dynamic_rotate %259 by %c17_i32_238 dim 1 : vector<8x256xf32>, i32 -> vector<8x256xf32>
    %c0_239 = arith.constant 0 : index
    %c0_240 = arith.constant 0 : index
    %261 = vector.load %arg2[%c0_239, %c0_240] : memref<9x256xf32, #tpu.memory_space<vmem>>, vector<1x256xf32>
    %262 = vector.broadcast %261 : vector<1x256xf32> to vector<8x256xf32>
    %263 = arith.mulf %260, %262 : vector<8x256xf32>
    %c16_i32_241 = arith.constant 16 : i32
    %264 = tpu.dynamic_rotate %259 by %c16_i32_241 dim 1 : vector<8x256xf32>, i32 -> vector<8x256xf32>
    %c1_242 = arith.constant 1 : index
    %c0_243 = arith.constant 0 : index
    %265 = vector.load %arg2[%c1_242, %c0_243] : memref<9x256xf32, #tpu.memory_space<vmem>>, vector<1x256xf32>
    %266 = vector.broadcast %265 : vector<1x256xf32> to vector<8x256xf32>
    %267 = arith.mulf %264, %266 : vector<8x256xf32>
    %c15_i32_244 = arith.constant 15 : i32
    %268 = tpu.dynamic_rotate %259 by %c15_i32_244 dim 1 : vector<8x256xf32>, i32 -> vector<8x256xf32>
    %c2_245 = arith.constant 2 : index
    %c0_246 = arith.constant 0 : index
    %269 = vector.load %arg2[%c2_245, %c0_246] : memref<9x256xf32, #tpu.memory_space<vmem>>, vector<1x256xf32>
    %270 = vector.broadcast %269 : vector<1x256xf32> to vector<8x256xf32>
    %271 = arith.mulf %268, %270 : vector<8x256xf32>
    %c1_i32_247 = arith.constant 1 : i32
    %272 = tpu.dynamic_rotate %259 by %c1_i32_247 dim 1 : vector<8x256xf32>, i32 -> vector<8x256xf32>
    %c3_248 = arith.constant 3 : index
    %c0_249 = arith.constant 0 : index
    %273 = vector.load %arg2[%c3_248, %c0_249] : memref<9x256xf32, #tpu.memory_space<vmem>>, vector<1x256xf32>
    %274 = vector.broadcast %273 : vector<1x256xf32> to vector<8x256xf32>
    %275 = arith.mulf %272, %274 : vector<8x256xf32>
    %c255_i32_250 = arith.constant 255 : i32
    %276 = tpu.dynamic_rotate %259 by %c255_i32_250 dim 1 : vector<8x256xf32>, i32 -> vector<8x256xf32>
    %c5_251 = arith.constant 5 : index
    %c0_252 = arith.constant 0 : index
    %277 = vector.load %arg2[%c5_251, %c0_252] : memref<9x256xf32, #tpu.memory_space<vmem>>, vector<1x256xf32>
    %278 = vector.broadcast %277 : vector<1x256xf32> to vector<8x256xf32>
    %279 = arith.mulf %276, %278 : vector<8x256xf32>
    %c241_i32_253 = arith.constant 241 : i32
    %280 = tpu.dynamic_rotate %259 by %c241_i32_253 dim 1 : vector<8x256xf32>, i32 -> vector<8x256xf32>
    %c6_254 = arith.constant 6 : index
    %c0_255 = arith.constant 0 : index
    %281 = vector.load %arg2[%c6_254, %c0_255] : memref<9x256xf32, #tpu.memory_space<vmem>>, vector<1x256xf32>
    %282 = vector.broadcast %281 : vector<1x256xf32> to vector<8x256xf32>
    %283 = arith.mulf %280, %282 : vector<8x256xf32>
    %c240_i32_256 = arith.constant 240 : i32
    %284 = tpu.dynamic_rotate %259 by %c240_i32_256 dim 1 : vector<8x256xf32>, i32 -> vector<8x256xf32>
    %c7_257 = arith.constant 7 : index
    %c0_258 = arith.constant 0 : index
    %285 = vector.load %arg2[%c7_257, %c0_258] : memref<9x256xf32, #tpu.memory_space<vmem>>, vector<1x256xf32>
    %286 = vector.broadcast %285 : vector<1x256xf32> to vector<8x256xf32>
    %287 = arith.mulf %284, %286 : vector<8x256xf32>
    %c239_i32_259 = arith.constant 239 : i32
    %288 = tpu.dynamic_rotate %259 by %c239_i32_259 dim 1 : vector<8x256xf32>, i32 -> vector<8x256xf32>
    %c8_260 = arith.constant 8 : index
    %c0_261 = arith.constant 0 : index
    %289 = vector.load %arg2[%c8_260, %c0_261] : memref<9x256xf32, #tpu.memory_space<vmem>>, vector<1x256xf32>
    %290 = vector.broadcast %289 : vector<1x256xf32> to vector<8x256xf32>
    %291 = arith.mulf %288, %290 : vector<8x256xf32>
    %cst_262 = arith.constant 0.000000e+00 : f32
    %292 = vector.broadcast %cst_262 : f32 to vector<2x256xf32>
    %c0_263 = arith.constant 0 : index
    %c3_264 = arith.constant 3 : index
    %c0_265 = arith.constant 0 : index
    %c0_266 = arith.constant 0 : index
    %c0_267 = arith.constant 0 : index
    %293 = vector.load %arg3[%c0_263, %c3_264, %c0_265, %c0_266, %c0_267] : memref<2x4x9x8x8xf32, #tpu.memory_space<vmem>>, vector<1x1x1x8x8xf32>
    %294 = vector.shape_cast %293 : vector<1x1x1x8x8xf32> to vector<8x8xf32>
    %295 = vector.extract_strided_slice %294 {offsets = [0, 0], sizes = [2, 8], strides = [1, 1]} : vector<8x8xf32> to vector<2x8xf32>
    %cst_268 = arith.constant dense<0.000000e+00> : vector<2x256xf32>
    %296 = tpu.matmul %295, %263, %cst_268 {dimension_numbers = #tpu.dot_dimension_numbers<[1], [0], [0], [1], [0, 0, 1, 1], [], []>} : vector<2x8xf32>, vector<8x256xf32>, vector<2x256xf32> -> vector<2x256xf32>
    %297 = arith.addf %292, %296 : vector<2x256xf32>
    %c0_269 = arith.constant 0 : index
    %c3_270 = arith.constant 3 : index
    %c1_271 = arith.constant 1 : index
    %c0_272 = arith.constant 0 : index
    %c0_273 = arith.constant 0 : index
    %298 = vector.load %arg3[%c0_269, %c3_270, %c1_271, %c0_272, %c0_273] : memref<2x4x9x8x8xf32, #tpu.memory_space<vmem>>, vector<1x1x1x8x8xf32>
    %299 = vector.shape_cast %298 : vector<1x1x1x8x8xf32> to vector<8x8xf32>
    %300 = vector.extract_strided_slice %299 {offsets = [0, 0], sizes = [2, 8], strides = [1, 1]} : vector<8x8xf32> to vector<2x8xf32>
    %cst_274 = arith.constant dense<0.000000e+00> : vector<2x256xf32>
    %301 = tpu.matmul %300, %267, %cst_274 {dimension_numbers = #tpu.dot_dimension_numbers<[1], [0], [0], [1], [0, 0, 1, 1], [], []>} : vector<2x8xf32>, vector<8x256xf32>, vector<2x256xf32> -> vector<2x256xf32>
    %302 = arith.addf %297, %301 : vector<2x256xf32>
    %c0_275 = arith.constant 0 : index
    %c3_276 = arith.constant 3 : index
    %c2_277 = arith.constant 2 : index
    %c0_278 = arith.constant 0 : index
    %c0_279 = arith.constant 0 : index
    %303 = vector.load %arg3[%c0_275, %c3_276, %c2_277, %c0_278, %c0_279] : memref<2x4x9x8x8xf32, #tpu.memory_space<vmem>>, vector<1x1x1x8x8xf32>
    %304 = vector.shape_cast %303 : vector<1x1x1x8x8xf32> to vector<8x8xf32>
    %305 = vector.extract_strided_slice %304 {offsets = [0, 0], sizes = [2, 8], strides = [1, 1]} : vector<8x8xf32> to vector<2x8xf32>
    %cst_280 = arith.constant dense<0.000000e+00> : vector<2x256xf32>
    %306 = tpu.matmul %305, %271, %cst_280 {dimension_numbers = #tpu.dot_dimension_numbers<[1], [0], [0], [1], [0, 0, 1, 1], [], []>} : vector<2x8xf32>, vector<8x256xf32>, vector<2x256xf32> -> vector<2x256xf32>
    %307 = arith.addf %302, %306 : vector<2x256xf32>
    %c0_281 = arith.constant 0 : index
    %c3_282 = arith.constant 3 : index
    %c3_283 = arith.constant 3 : index
    %c0_284 = arith.constant 0 : index
    %c0_285 = arith.constant 0 : index
    %308 = vector.load %arg3[%c0_281, %c3_282, %c3_283, %c0_284, %c0_285] : memref<2x4x9x8x8xf32, #tpu.memory_space<vmem>>, vector<1x1x1x8x8xf32>
    %309 = vector.shape_cast %308 : vector<1x1x1x8x8xf32> to vector<8x8xf32>
    %310 = vector.extract_strided_slice %309 {offsets = [0, 0], sizes = [2, 8], strides = [1, 1]} : vector<8x8xf32> to vector<2x8xf32>
    %cst_286 = arith.constant dense<0.000000e+00> : vector<2x256xf32>
    %311 = tpu.matmul %310, %275, %cst_286 {dimension_numbers = #tpu.dot_dimension_numbers<[1], [0], [0], [1], [0, 0, 1, 1], [], []>} : vector<2x8xf32>, vector<8x256xf32>, vector<2x256xf32> -> vector<2x256xf32>
    %312 = arith.addf %307, %311 : vector<2x256xf32>
    %c0_287 = arith.constant 0 : index
    %c3_288 = arith.constant 3 : index
    %c4_289 = arith.constant 4 : index
    %c0_290 = arith.constant 0 : index
    %c0_291 = arith.constant 0 : index
    %313 = vector.load %arg3[%c0_287, %c3_288, %c4_289, %c0_290, %c0_291] : memref<2x4x9x8x8xf32, #tpu.memory_space<vmem>>, vector<1x1x1x8x8xf32>
    %314 = vector.shape_cast %313 : vector<1x1x1x8x8xf32> to vector<8x8xf32>
    %315 = vector.extract_strided_slice %314 {offsets = [0, 0], sizes = [2, 8], strides = [1, 1]} : vector<8x8xf32> to vector<2x8xf32>
    %cst_292 = arith.constant dense<0.000000e+00> : vector<2x256xf32>
    %316 = tpu.matmul %315, %259, %cst_292 {dimension_numbers = #tpu.dot_dimension_numbers<[1], [0], [0], [1], [0, 0, 1, 1], [], []>} : vector<2x8xf32>, vector<8x256xf32>, vector<2x256xf32> -> vector<2x256xf32>
    %317 = arith.addf %312, %316 : vector<2x256xf32>
    %c0_293 = arith.constant 0 : index
    %c3_294 = arith.constant 3 : index
    %c5_295 = arith.constant 5 : index
    %c0_296 = arith.constant 0 : index
    %c0_297 = arith.constant 0 : index
    %318 = vector.load %arg3[%c0_293, %c3_294, %c5_295, %c0_296, %c0_297] : memref<2x4x9x8x8xf32, #tpu.memory_space<vmem>>, vector<1x1x1x8x8xf32>
    %319 = vector.shape_cast %318 : vector<1x1x1x8x8xf32> to vector<8x8xf32>
    %320 = vector.extract_strided_slice %319 {offsets = [0, 0], sizes = [2, 8], strides = [1, 1]} : vector<8x8xf32> to vector<2x8xf32>
    %cst_298 = arith.constant dense<0.000000e+00> : vector<2x256xf32>
    %321 = tpu.matmul %320, %279, %cst_298 {dimension_numbers = #tpu.dot_dimension_numbers<[1], [0], [0], [1], [0, 0, 1, 1], [], []>} : vector<2x8xf32>, vector<8x256xf32>, vector<2x256xf32> -> vector<2x256xf32>
    %322 = arith.addf %317, %321 : vector<2x256xf32>
    %c0_299 = arith.constant 0 : index
    %c3_300 = arith.constant 3 : index
    %c6_301 = arith.constant 6 : index
    %c0_302 = arith.constant 0 : index
    %c0_303 = arith.constant 0 : index
    %323 = vector.load %arg3[%c0_299, %c3_300, %c6_301, %c0_302, %c0_303] : memref<2x4x9x8x8xf32, #tpu.memory_space<vmem>>, vector<1x1x1x8x8xf32>
    %324 = vector.shape_cast %323 : vector<1x1x1x8x8xf32> to vector<8x8xf32>
    %325 = vector.extract_strided_slice %324 {offsets = [0, 0], sizes = [2, 8], strides = [1, 1]} : vector<8x8xf32> to vector<2x8xf32>
    %cst_304 = arith.constant dense<0.000000e+00> : vector<2x256xf32>
    %326 = tpu.matmul %325, %283, %cst_304 {dimension_numbers = #tpu.dot_dimension_numbers<[1], [0], [0], [1], [0, 0, 1, 1], [], []>} : vector<2x8xf32>, vector<8x256xf32>, vector<2x256xf32> -> vector<2x256xf32>
    %327 = arith.addf %322, %326 : vector<2x256xf32>
    %c0_305 = arith.constant 0 : index
    %c3_306 = arith.constant 3 : index
    %c7_307 = arith.constant 7 : index
    %c0_308 = arith.constant 0 : index
    %c0_309 = arith.constant 0 : index
    %328 = vector.load %arg3[%c0_305, %c3_306, %c7_307, %c0_308, %c0_309] : memref<2x4x9x8x8xf32, #tpu.memory_space<vmem>>, vector<1x1x1x8x8xf32>
    %329 = vector.shape_cast %328 : vector<1x1x1x8x8xf32> to vector<8x8xf32>
    %330 = vector.extract_strided_slice %329 {offsets = [0, 0], sizes = [2, 8], strides = [1, 1]} : vector<8x8xf32> to vector<2x8xf32>
    %cst_310 = arith.constant dense<0.000000e+00> : vector<2x256xf32>
    %331 = tpu.matmul %330, %287, %cst_310 {dimension_numbers = #tpu.dot_dimension_numbers<[1], [0], [0], [1], [0, 0, 1, 1], [], []>} : vector<2x8xf32>, vector<8x256xf32>, vector<2x256xf32> -> vector<2x256xf32>
    %332 = arith.addf %327, %331 : vector<2x256xf32>
    %c0_311 = arith.constant 0 : index
    %c3_312 = arith.constant 3 : index
    %c8_313 = arith.constant 8 : index
    %c0_314 = arith.constant 0 : index
    %c0_315 = arith.constant 0 : index
    %333 = vector.load %arg3[%c0_311, %c3_312, %c8_313, %c0_314, %c0_315] : memref<2x4x9x8x8xf32, #tpu.memory_space<vmem>>, vector<1x1x1x8x8xf32>
    %334 = vector.shape_cast %333 : vector<1x1x1x8x8xf32> to vector<8x8xf32>
    %335 = vector.extract_strided_slice %334 {offsets = [0, 0], sizes = [2, 8], strides = [1, 1]} : vector<8x8xf32> to vector<2x8xf32>
    %cst_316 = arith.constant dense<0.000000e+00> : vector<2x256xf32>
    %336 = tpu.matmul %335, %291, %cst_316 {dimension_numbers = #tpu.dot_dimension_numbers<[1], [0], [0], [1], [0, 0, 1, 1], [], []>} : vector<2x8xf32>, vector<8x256xf32>, vector<2x256xf32> -> vector<2x256xf32>
    %337 = arith.addf %332, %336 : vector<2x256xf32>
    %c0_317 = arith.constant 0 : index
    %c3_318 = arith.constant 3 : index
    %c0_319 = arith.constant 0 : index
    %c0_320 = arith.constant 0 : index
    %338 = vector.load %arg4[%c0_317, %c3_318, %c0_319, %c0_320] : memref<2x4x8x1xf32, #tpu.memory_space<vmem>>, vector<1x1x8x1xf32>
    %339 = vector.shape_cast %338 : vector<1x1x8x1xf32> to vector<8x1xf32>
    %340 = vector.extract_strided_slice %339 {offsets = [0, 0], sizes = [2, 1], strides = [1, 1]} : vector<8x1xf32> to vector<2x1xf32>
    %341 = vector.broadcast %340 : vector<2x1xf32> to vector<2x256xf32>
    %342 = arith.addf %337, %341 : vector<2x256xf32>
    %343 = arith.addf %342, %2 : vector<2x256xf32>
    %344 = vector.extract_strided_slice %173 {offsets = [0, 0], sizes = [1, 256], strides = [1, 1]} : vector<2x256xf32> to vector<1x256xf32>
    %345 = tpu.concatenate %343, %344 in 0 : vector<2x256xf32>, vector<1x256xf32> -> vector<3x256xf32>
    %c17_i32_321 = arith.constant 17 : i32
    %346 = tpu.dynamic_rotate %345 by %c17_i32_321 dim 1 : vector<3x256xf32>, i32 -> vector<3x256xf32>
    %c0_322 = arith.constant 0 : index
    %c0_323 = arith.constant 0 : index
    %347 = vector.load %arg2[%c0_322, %c0_323] : memref<9x256xf32, #tpu.memory_space<vmem>>, vector<1x256xf32>
    %348 = vector.broadcast %347 : vector<1x256xf32> to vector<3x256xf32>
    %349 = arith.mulf %346, %348 : vector<3x256xf32>
    %c16_i32_324 = arith.constant 16 : i32
    %350 = tpu.dynamic_rotate %345 by %c16_i32_324 dim 1 : vector<3x256xf32>, i32 -> vector<3x256xf32>
    %c1_325 = arith.constant 1 : index
    %c0_326 = arith.constant 0 : index
    %351 = vector.load %arg2[%c1_325, %c0_326] : memref<9x256xf32, #tpu.memory_space<vmem>>, vector<1x256xf32>
    %352 = vector.broadcast %351 : vector<1x256xf32> to vector<3x256xf32>
    %353 = arith.mulf %350, %352 : vector<3x256xf32>
    %c15_i32_327 = arith.constant 15 : i32
    %354 = tpu.dynamic_rotate %345 by %c15_i32_327 dim 1 : vector<3x256xf32>, i32 -> vector<3x256xf32>
    %c2_328 = arith.constant 2 : index
    %c0_329 = arith.constant 0 : index
    %355 = vector.load %arg2[%c2_328, %c0_329] : memref<9x256xf32, #tpu.memory_space<vmem>>, vector<1x256xf32>
    %356 = vector.broadcast %355 : vector<1x256xf32> to vector<3x256xf32>
    %357 = arith.mulf %354, %356 : vector<3x256xf32>
    %c1_i32_330 = arith.constant 1 : i32
    %358 = tpu.dynamic_rotate %345 by %c1_i32_330 dim 1 : vector<3x256xf32>, i32 -> vector<3x256xf32>
    %c3_331 = arith.constant 3 : index
    %c0_332 = arith.constant 0 : index
    %359 = vector.load %arg2[%c3_331, %c0_332] : memref<9x256xf32, #tpu.memory_space<vmem>>, vector<1x256xf32>
    %360 = vector.broadcast %359 : vector<1x256xf32> to vector<3x256xf32>
    %361 = arith.mulf %358, %360 : vector<3x256xf32>
    %c255_i32_333 = arith.constant 255 : i32
    %362 = tpu.dynamic_rotate %345 by %c255_i32_333 dim 1 : vector<3x256xf32>, i32 -> vector<3x256xf32>
    %c5_334 = arith.constant 5 : index
    %c0_335 = arith.constant 0 : index
    %363 = vector.load %arg2[%c5_334, %c0_335] : memref<9x256xf32, #tpu.memory_space<vmem>>, vector<1x256xf32>
    %364 = vector.broadcast %363 : vector<1x256xf32> to vector<3x256xf32>
    %365 = arith.mulf %362, %364 : vector<3x256xf32>
    %c241_i32_336 = arith.constant 241 : i32
    %366 = tpu.dynamic_rotate %345 by %c241_i32_336 dim 1 : vector<3x256xf32>, i32 -> vector<3x256xf32>
    %c6_337 = arith.constant 6 : index
    %c0_338 = arith.constant 0 : index
    %367 = vector.load %arg2[%c6_337, %c0_338] : memref<9x256xf32, #tpu.memory_space<vmem>>, vector<1x256xf32>
    %368 = vector.broadcast %367 : vector<1x256xf32> to vector<3x256xf32>
    %369 = arith.mulf %366, %368 : vector<3x256xf32>
    %c240_i32_339 = arith.constant 240 : i32
    %370 = tpu.dynamic_rotate %345 by %c240_i32_339 dim 1 : vector<3x256xf32>, i32 -> vector<3x256xf32>
    %c7_340 = arith.constant 7 : index
    %c0_341 = arith.constant 0 : index
    %371 = vector.load %arg2[%c7_340, %c0_341] : memref<9x256xf32, #tpu.memory_space<vmem>>, vector<1x256xf32>
    %372 = vector.broadcast %371 : vector<1x256xf32> to vector<3x256xf32>
    %373 = arith.mulf %370, %372 : vector<3x256xf32>
    %c239_i32_342 = arith.constant 239 : i32
    %374 = tpu.dynamic_rotate %345 by %c239_i32_342 dim 1 : vector<3x256xf32>, i32 -> vector<3x256xf32>
    %c8_343 = arith.constant 8 : index
    %c0_344 = arith.constant 0 : index
    %375 = vector.load %arg2[%c8_343, %c0_344] : memref<9x256xf32, #tpu.memory_space<vmem>>, vector<1x256xf32>
    %376 = vector.broadcast %375 : vector<1x256xf32> to vector<3x256xf32>
    %377 = arith.mulf %374, %376 : vector<3x256xf32>
    %cst_345 = arith.constant 0.000000e+00 : f32
    %378 = vector.broadcast %cst_345 : f32 to vector<8x256xf32>
    %c1_346 = arith.constant 1 : index
    %c2_347 = arith.constant 2 : index
    %c0_348 = arith.constant 0 : index
    %c0_349 = arith.constant 0 : index
    %c0_350 = arith.constant 0 : index
    %379 = vector.load %arg3[%c1_346, %c2_347, %c0_348, %c0_349, %c0_350] : memref<2x4x9x8x8xf32, #tpu.memory_space<vmem>>, vector<1x1x1x8x8xf32>
    %380 = vector.shape_cast %379 : vector<1x1x1x8x8xf32> to vector<8x8xf32>
    %381 = vector.extract_strided_slice %380 {offsets = [0, 0], sizes = [8, 3], strides = [1, 1]} : vector<8x8xf32> to vector<8x3xf32>
    %cst_351 = arith.constant dense<0.000000e+00> : vector<8x256xf32>
    %382 = tpu.matmul %381, %349, %cst_351 {dimension_numbers = #tpu.dot_dimension_numbers<[1], [0], [0], [1], [0, 0, 1, 1], [], []>} : vector<8x3xf32>, vector<3x256xf32>, vector<8x256xf32> -> vector<8x256xf32>
    %383 = arith.addf %378, %382 : vector<8x256xf32>
    %c1_352 = arith.constant 1 : index
    %c2_353 = arith.constant 2 : index
    %c1_354 = arith.constant 1 : index
    %c0_355 = arith.constant 0 : index
    %c0_356 = arith.constant 0 : index
    %384 = vector.load %arg3[%c1_352, %c2_353, %c1_354, %c0_355, %c0_356] : memref<2x4x9x8x8xf32, #tpu.memory_space<vmem>>, vector<1x1x1x8x8xf32>
    %385 = vector.shape_cast %384 : vector<1x1x1x8x8xf32> to vector<8x8xf32>
    %386 = vector.extract_strided_slice %385 {offsets = [0, 0], sizes = [8, 3], strides = [1, 1]} : vector<8x8xf32> to vector<8x3xf32>
    %cst_357 = arith.constant dense<0.000000e+00> : vector<8x256xf32>
    %387 = tpu.matmul %386, %353, %cst_357 {dimension_numbers = #tpu.dot_dimension_numbers<[1], [0], [0], [1], [0, 0, 1, 1], [], []>} : vector<8x3xf32>, vector<3x256xf32>, vector<8x256xf32> -> vector<8x256xf32>
    %388 = arith.addf %383, %387 : vector<8x256xf32>
    %c1_358 = arith.constant 1 : index
    %c2_359 = arith.constant 2 : index
    %c2_360 = arith.constant 2 : index
    %c0_361 = arith.constant 0 : index
    %c0_362 = arith.constant 0 : index
    %389 = vector.load %arg3[%c1_358, %c2_359, %c2_360, %c0_361, %c0_362] : memref<2x4x9x8x8xf32, #tpu.memory_space<vmem>>, vector<1x1x1x8x8xf32>
    %390 = vector.shape_cast %389 : vector<1x1x1x8x8xf32> to vector<8x8xf32>
    %391 = vector.extract_strided_slice %390 {offsets = [0, 0], sizes = [8, 3], strides = [1, 1]} : vector<8x8xf32> to vector<8x3xf32>
    %cst_363 = arith.constant dense<0.000000e+00> : vector<8x256xf32>
    %392 = tpu.matmul %391, %357, %cst_363 {dimension_numbers = #tpu.dot_dimension_numbers<[1], [0], [0], [1], [0, 0, 1, 1], [], []>} : vector<8x3xf32>, vector<3x256xf32>, vector<8x256xf32> -> vector<8x256xf32>
    %393 = arith.addf %388, %392 : vector<8x256xf32>
    %c1_364 = arith.constant 1 : index
    %c2_365 = arith.constant 2 : index
    %c3_366 = arith.constant 3 : index
    %c0_367 = arith.constant 0 : index
    %c0_368 = arith.constant 0 : index
    %394 = vector.load %arg3[%c1_364, %c2_365, %c3_366, %c0_367, %c0_368] : memref<2x4x9x8x8xf32, #tpu.memory_space<vmem>>, vector<1x1x1x8x8xf32>
    %395 = vector.shape_cast %394 : vector<1x1x1x8x8xf32> to vector<8x8xf32>
    %396 = vector.extract_strided_slice %395 {offsets = [0, 0], sizes = [8, 3], strides = [1, 1]} : vector<8x8xf32> to vector<8x3xf32>
    %cst_369 = arith.constant dense<0.000000e+00> : vector<8x256xf32>
    %397 = tpu.matmul %396, %361, %cst_369 {dimension_numbers = #tpu.dot_dimension_numbers<[1], [0], [0], [1], [0, 0, 1, 1], [], []>} : vector<8x3xf32>, vector<3x256xf32>, vector<8x256xf32> -> vector<8x256xf32>
    %398 = arith.addf %393, %397 : vector<8x256xf32>
    %c1_370 = arith.constant 1 : index
    %c2_371 = arith.constant 2 : index
    %c4_372 = arith.constant 4 : index
    %c0_373 = arith.constant 0 : index
    %c0_374 = arith.constant 0 : index
    %399 = vector.load %arg3[%c1_370, %c2_371, %c4_372, %c0_373, %c0_374] : memref<2x4x9x8x8xf32, #tpu.memory_space<vmem>>, vector<1x1x1x8x8xf32>
    %400 = vector.shape_cast %399 : vector<1x1x1x8x8xf32> to vector<8x8xf32>
    %401 = vector.extract_strided_slice %400 {offsets = [0, 0], sizes = [8, 3], strides = [1, 1]} : vector<8x8xf32> to vector<8x3xf32>
    %cst_375 = arith.constant dense<0.000000e+00> : vector<8x256xf32>
    %402 = tpu.matmul %401, %345, %cst_375 {dimension_numbers = #tpu.dot_dimension_numbers<[1], [0], [0], [1], [0, 0, 1, 1], [], []>} : vector<8x3xf32>, vector<3x256xf32>, vector<8x256xf32> -> vector<8x256xf32>
    %403 = arith.addf %398, %402 : vector<8x256xf32>
    %c1_376 = arith.constant 1 : index
    %c2_377 = arith.constant 2 : index
    %c5_378 = arith.constant 5 : index
    %c0_379 = arith.constant 0 : index
    %c0_380 = arith.constant 0 : index
    %404 = vector.load %arg3[%c1_376, %c2_377, %c5_378, %c0_379, %c0_380] : memref<2x4x9x8x8xf32, #tpu.memory_space<vmem>>, vector<1x1x1x8x8xf32>
    %405 = vector.shape_cast %404 : vector<1x1x1x8x8xf32> to vector<8x8xf32>
    %406 = vector.extract_strided_slice %405 {offsets = [0, 0], sizes = [8, 3], strides = [1, 1]} : vector<8x8xf32> to vector<8x3xf32>
    %cst_381 = arith.constant dense<0.000000e+00> : vector<8x256xf32>
    %407 = tpu.matmul %406, %365, %cst_381 {dimension_numbers = #tpu.dot_dimension_numbers<[1], [0], [0], [1], [0, 0, 1, 1], [], []>} : vector<8x3xf32>, vector<3x256xf32>, vector<8x256xf32> -> vector<8x256xf32>
    %408 = arith.addf %403, %407 : vector<8x256xf32>
    %c1_382 = arith.constant 1 : index
    %c2_383 = arith.constant 2 : index
    %c6_384 = arith.constant 6 : index
    %c0_385 = arith.constant 0 : index
    %c0_386 = arith.constant 0 : index
    %409 = vector.load %arg3[%c1_382, %c2_383, %c6_384, %c0_385, %c0_386] : memref<2x4x9x8x8xf32, #tpu.memory_space<vmem>>, vector<1x1x1x8x8xf32>
    %410 = vector.shape_cast %409 : vector<1x1x1x8x8xf32> to vector<8x8xf32>
    %411 = vector.extract_strided_slice %410 {offsets = [0, 0], sizes = [8, 3], strides = [1, 1]} : vector<8x8xf32> to vector<8x3xf32>
    %cst_387 = arith.constant dense<0.000000e+00> : vector<8x256xf32>
    %412 = tpu.matmul %411, %369, %cst_387 {dimension_numbers = #tpu.dot_dimension_numbers<[1], [0], [0], [1], [0, 0, 1, 1], [], []>} : vector<8x3xf32>, vector<3x256xf32>, vector<8x256xf32> -> vector<8x256xf32>
    %413 = arith.addf %408, %412 : vector<8x256xf32>
    %c1_388 = arith.constant 1 : index
    %c2_389 = arith.constant 2 : index
    %c7_390 = arith.constant 7 : index
    %c0_391 = arith.constant 0 : index
    %c0_392 = arith.constant 0 : index
    %414 = vector.load %arg3[%c1_388, %c2_389, %c7_390, %c0_391, %c0_392] : memref<2x4x9x8x8xf32, #tpu.memory_space<vmem>>, vector<1x1x1x8x8xf32>
    %415 = vector.shape_cast %414 : vector<1x1x1x8x8xf32> to vector<8x8xf32>
    %416 = vector.extract_strided_slice %415 {offsets = [0, 0], sizes = [8, 3], strides = [1, 1]} : vector<8x8xf32> to vector<8x3xf32>
    %cst_393 = arith.constant dense<0.000000e+00> : vector<8x256xf32>
    %417 = tpu.matmul %416, %373, %cst_393 {dimension_numbers = #tpu.dot_dimension_numbers<[1], [0], [0], [1], [0, 0, 1, 1], [], []>} : vector<8x3xf32>, vector<3x256xf32>, vector<8x256xf32> -> vector<8x256xf32>
    %418 = arith.addf %413, %417 : vector<8x256xf32>
    %c1_394 = arith.constant 1 : index
    %c2_395 = arith.constant 2 : index
    %c8_396 = arith.constant 8 : index
    %c0_397 = arith.constant 0 : index
    %c0_398 = arith.constant 0 : index
    %419 = vector.load %arg3[%c1_394, %c2_395, %c8_396, %c0_397, %c0_398] : memref<2x4x9x8x8xf32, #tpu.memory_space<vmem>>, vector<1x1x1x8x8xf32>
    %420 = vector.shape_cast %419 : vector<1x1x1x8x8xf32> to vector<8x8xf32>
    %421 = vector.extract_strided_slice %420 {offsets = [0, 0], sizes = [8, 3], strides = [1, 1]} : vector<8x8xf32> to vector<8x3xf32>
    %cst_399 = arith.constant dense<0.000000e+00> : vector<8x256xf32>
    %422 = tpu.matmul %421, %377, %cst_399 {dimension_numbers = #tpu.dot_dimension_numbers<[1], [0], [0], [1], [0, 0, 1, 1], [], []>} : vector<8x3xf32>, vector<3x256xf32>, vector<8x256xf32> -> vector<8x256xf32>
    %423 = arith.addf %418, %422 : vector<8x256xf32>
    %c1_400 = arith.constant 1 : index
    %c2_401 = arith.constant 2 : index
    %c0_402 = arith.constant 0 : index
    %c0_403 = arith.constant 0 : index
    %424 = vector.load %arg4[%c1_400, %c2_401, %c0_402, %c0_403] : memref<2x4x8x1xf32, #tpu.memory_space<vmem>>, vector<1x1x8x1xf32>
    %425 = vector.shape_cast %424 : vector<1x1x8x1xf32> to vector<8x1xf32>
    %426 = vector.broadcast %425 : vector<8x1xf32> to vector<8x256xf32>
    %427 = arith.addf %423, %426 : vector<8x256xf32>
    %cst_404 = arith.constant 0.000000e+00 : f32
    %428 = vector.broadcast %cst_404 : f32 to vector<8x256xf32>
    %429 = arith.maximumf %427, %428 : vector<8x256xf32>
    %c17_i32_405 = arith.constant 17 : i32
    %430 = tpu.dynamic_rotate %429 by %c17_i32_405 dim 1 : vector<8x256xf32>, i32 -> vector<8x256xf32>
    %c0_406 = arith.constant 0 : index
    %c0_407 = arith.constant 0 : index
    %431 = vector.load %arg2[%c0_406, %c0_407] : memref<9x256xf32, #tpu.memory_space<vmem>>, vector<1x256xf32>
    %432 = vector.broadcast %431 : vector<1x256xf32> to vector<8x256xf32>
    %433 = arith.mulf %430, %432 : vector<8x256xf32>
    %c16_i32_408 = arith.constant 16 : i32
    %434 = tpu.dynamic_rotate %429 by %c16_i32_408 dim 1 : vector<8x256xf32>, i32 -> vector<8x256xf32>
    %c1_409 = arith.constant 1 : index
    %c0_410 = arith.constant 0 : index
    %435 = vector.load %arg2[%c1_409, %c0_410] : memref<9x256xf32, #tpu.memory_space<vmem>>, vector<1x256xf32>
    %436 = vector.broadcast %435 : vector<1x256xf32> to vector<8x256xf32>
    %437 = arith.mulf %434, %436 : vector<8x256xf32>
    %c15_i32_411 = arith.constant 15 : i32
    %438 = tpu.dynamic_rotate %429 by %c15_i32_411 dim 1 : vector<8x256xf32>, i32 -> vector<8x256xf32>
    %c2_412 = arith.constant 2 : index
    %c0_413 = arith.constant 0 : index
    %439 = vector.load %arg2[%c2_412, %c0_413] : memref<9x256xf32, #tpu.memory_space<vmem>>, vector<1x256xf32>
    %440 = vector.broadcast %439 : vector<1x256xf32> to vector<8x256xf32>
    %441 = arith.mulf %438, %440 : vector<8x256xf32>
    %c1_i32_414 = arith.constant 1 : i32
    %442 = tpu.dynamic_rotate %429 by %c1_i32_414 dim 1 : vector<8x256xf32>, i32 -> vector<8x256xf32>
    %c3_415 = arith.constant 3 : index
    %c0_416 = arith.constant 0 : index
    %443 = vector.load %arg2[%c3_415, %c0_416] : memref<9x256xf32, #tpu.memory_space<vmem>>, vector<1x256xf32>
    %444 = vector.broadcast %443 : vector<1x256xf32> to vector<8x256xf32>
    %445 = arith.mulf %442, %444 : vector<8x256xf32>
    %c255_i32_417 = arith.constant 255 : i32
    %446 = tpu.dynamic_rotate %429 by %c255_i32_417 dim 1 : vector<8x256xf32>, i32 -> vector<8x256xf32>
    %c5_418 = arith.constant 5 : index
    %c0_419 = arith.constant 0 : index
    %447 = vector.load %arg2[%c5_418, %c0_419] : memref<9x256xf32, #tpu.memory_space<vmem>>, vector<1x256xf32>
    %448 = vector.broadcast %447 : vector<1x256xf32> to vector<8x256xf32>
    %449 = arith.mulf %446, %448 : vector<8x256xf32>
    %c241_i32_420 = arith.constant 241 : i32
    %450 = tpu.dynamic_rotate %429 by %c241_i32_420 dim 1 : vector<8x256xf32>, i32 -> vector<8x256xf32>
    %c6_421 = arith.constant 6 : index
    %c0_422 = arith.constant 0 : index
    %451 = vector.load %arg2[%c6_421, %c0_422] : memref<9x256xf32, #tpu.memory_space<vmem>>, vector<1x256xf32>
    %452 = vector.broadcast %451 : vector<1x256xf32> to vector<8x256xf32>
    %453 = arith.mulf %450, %452 : vector<8x256xf32>
    %c240_i32_423 = arith.constant 240 : i32
    %454 = tpu.dynamic_rotate %429 by %c240_i32_423 dim 1 : vector<8x256xf32>, i32 -> vector<8x256xf32>
    %c7_424 = arith.constant 7 : index
    %c0_425 = arith.constant 0 : index
    %455 = vector.load %arg2[%c7_424, %c0_425] : memref<9x256xf32, #tpu.memory_space<vmem>>, vector<1x256xf32>
    %456 = vector.broadcast %455 : vector<1x256xf32> to vector<8x256xf32>
    %457 = arith.mulf %454, %456 : vector<8x256xf32>
    %c239_i32_426 = arith.constant 239 : i32
    %458 = tpu.dynamic_rotate %429 by %c239_i32_426 dim 1 : vector<8x256xf32>, i32 -> vector<8x256xf32>
    %c8_427 = arith.constant 8 : index
    %c0_428 = arith.constant 0 : index
    %459 = vector.load %arg2[%c8_427, %c0_428] : memref<9x256xf32, #tpu.memory_space<vmem>>, vector<1x256xf32>
    %460 = vector.broadcast %459 : vector<1x256xf32> to vector<8x256xf32>
    %461 = arith.mulf %458, %460 : vector<8x256xf32>
    %cst_429 = arith.constant 0.000000e+00 : f32
    %462 = vector.broadcast %cst_429 : f32 to vector<2x256xf32>
    %c1_430 = arith.constant 1 : index
    %c3_431 = arith.constant 3 : index
    %c0_432 = arith.constant 0 : index
    %c0_433 = arith.constant 0 : index
    %c0_434 = arith.constant 0 : index
    %463 = vector.load %arg3[%c1_430, %c3_431, %c0_432, %c0_433, %c0_434] : memref<2x4x9x8x8xf32, #tpu.memory_space<vmem>>, vector<1x1x1x8x8xf32>
    %464 = vector.shape_cast %463 : vector<1x1x1x8x8xf32> to vector<8x8xf32>
    %465 = vector.extract_strided_slice %464 {offsets = [0, 0], sizes = [2, 8], strides = [1, 1]} : vector<8x8xf32> to vector<2x8xf32>
    %cst_435 = arith.constant dense<0.000000e+00> : vector<2x256xf32>
    %466 = tpu.matmul %465, %433, %cst_435 {dimension_numbers = #tpu.dot_dimension_numbers<[1], [0], [0], [1], [0, 0, 1, 1], [], []>} : vector<2x8xf32>, vector<8x256xf32>, vector<2x256xf32> -> vector<2x256xf32>
    %467 = arith.addf %462, %466 : vector<2x256xf32>
    %c1_436 = arith.constant 1 : index
    %c3_437 = arith.constant 3 : index
    %c1_438 = arith.constant 1 : index
    %c0_439 = arith.constant 0 : index
    %c0_440 = arith.constant 0 : index
    %468 = vector.load %arg3[%c1_436, %c3_437, %c1_438, %c0_439, %c0_440] : memref<2x4x9x8x8xf32, #tpu.memory_space<vmem>>, vector<1x1x1x8x8xf32>
    %469 = vector.shape_cast %468 : vector<1x1x1x8x8xf32> to vector<8x8xf32>
    %470 = vector.extract_strided_slice %469 {offsets = [0, 0], sizes = [2, 8], strides = [1, 1]} : vector<8x8xf32> to vector<2x8xf32>
    %cst_441 = arith.constant dense<0.000000e+00> : vector<2x256xf32>
    %471 = tpu.matmul %470, %437, %cst_441 {dimension_numbers = #tpu.dot_dimension_numbers<[1], [0], [0], [1], [0, 0, 1, 1], [], []>} : vector<2x8xf32>, vector<8x256xf32>, vector<2x256xf32> -> vector<2x256xf32>
    %472 = arith.addf %467, %471 : vector<2x256xf32>
    %c1_442 = arith.constant 1 : index
    %c3_443 = arith.constant 3 : index
    %c2_444 = arith.constant 2 : index
    %c0_445 = arith.constant 0 : index
    %c0_446 = arith.constant 0 : index
    %473 = vector.load %arg3[%c1_442, %c3_443, %c2_444, %c0_445, %c0_446] : memref<2x4x9x8x8xf32, #tpu.memory_space<vmem>>, vector<1x1x1x8x8xf32>
    %474 = vector.shape_cast %473 : vector<1x1x1x8x8xf32> to vector<8x8xf32>
    %475 = vector.extract_strided_slice %474 {offsets = [0, 0], sizes = [2, 8], strides = [1, 1]} : vector<8x8xf32> to vector<2x8xf32>
    %cst_447 = arith.constant dense<0.000000e+00> : vector<2x256xf32>
    %476 = tpu.matmul %475, %441, %cst_447 {dimension_numbers = #tpu.dot_dimension_numbers<[1], [0], [0], [1], [0, 0, 1, 1], [], []>} : vector<2x8xf32>, vector<8x256xf32>, vector<2x256xf32> -> vector<2x256xf32>
    %477 = arith.addf %472, %476 : vector<2x256xf32>
    %c1_448 = arith.constant 1 : index
    %c3_449 = arith.constant 3 : index
    %c3_450 = arith.constant 3 : index
    %c0_451 = arith.constant 0 : index
    %c0_452 = arith.constant 0 : index
    %478 = vector.load %arg3[%c1_448, %c3_449, %c3_450, %c0_451, %c0_452] : memref<2x4x9x8x8xf32, #tpu.memory_space<vmem>>, vector<1x1x1x8x8xf32>
    %479 = vector.shape_cast %478 : vector<1x1x1x8x8xf32> to vector<8x8xf32>
    %480 = vector.extract_strided_slice %479 {offsets = [0, 0], sizes = [2, 8], strides = [1, 1]} : vector<8x8xf32> to vector<2x8xf32>
    %cst_453 = arith.constant dense<0.000000e+00> : vector<2x256xf32>
    %481 = tpu.matmul %480, %445, %cst_453 {dimension_numbers = #tpu.dot_dimension_numbers<[1], [0], [0], [1], [0, 0, 1, 1], [], []>} : vector<2x8xf32>, vector<8x256xf32>, vector<2x256xf32> -> vector<2x256xf32>
    %482 = arith.addf %477, %481 : vector<2x256xf32>
    %c1_454 = arith.constant 1 : index
    %c3_455 = arith.constant 3 : index
    %c4_456 = arith.constant 4 : index
    %c0_457 = arith.constant 0 : index
    %c0_458 = arith.constant 0 : index
    %483 = vector.load %arg3[%c1_454, %c3_455, %c4_456, %c0_457, %c0_458] : memref<2x4x9x8x8xf32, #tpu.memory_space<vmem>>, vector<1x1x1x8x8xf32>
    %484 = vector.shape_cast %483 : vector<1x1x1x8x8xf32> to vector<8x8xf32>
    %485 = vector.extract_strided_slice %484 {offsets = [0, 0], sizes = [2, 8], strides = [1, 1]} : vector<8x8xf32> to vector<2x8xf32>
    %cst_459 = arith.constant dense<0.000000e+00> : vector<2x256xf32>
    %486 = tpu.matmul %485, %429, %cst_459 {dimension_numbers = #tpu.dot_dimension_numbers<[1], [0], [0], [1], [0, 0, 1, 1], [], []>} : vector<2x8xf32>, vector<8x256xf32>, vector<2x256xf32> -> vector<2x256xf32>
    %487 = arith.addf %482, %486 : vector<2x256xf32>
    %c1_460 = arith.constant 1 : index
    %c3_461 = arith.constant 3 : index
    %c5_462 = arith.constant 5 : index
    %c0_463 = arith.constant 0 : index
    %c0_464 = arith.constant 0 : index
    %488 = vector.load %arg3[%c1_460, %c3_461, %c5_462, %c0_463, %c0_464] : memref<2x4x9x8x8xf32, #tpu.memory_space<vmem>>, vector<1x1x1x8x8xf32>
    %489 = vector.shape_cast %488 : vector<1x1x1x8x8xf32> to vector<8x8xf32>
    %490 = vector.extract_strided_slice %489 {offsets = [0, 0], sizes = [2, 8], strides = [1, 1]} : vector<8x8xf32> to vector<2x8xf32>
    %cst_465 = arith.constant dense<0.000000e+00> : vector<2x256xf32>
    %491 = tpu.matmul %490, %449, %cst_465 {dimension_numbers = #tpu.dot_dimension_numbers<[1], [0], [0], [1], [0, 0, 1, 1], [], []>} : vector<2x8xf32>, vector<8x256xf32>, vector<2x256xf32> -> vector<2x256xf32>
    %492 = arith.addf %487, %491 : vector<2x256xf32>
    %c1_466 = arith.constant 1 : index
    %c3_467 = arith.constant 3 : index
    %c6_468 = arith.constant 6 : index
    %c0_469 = arith.constant 0 : index
    %c0_470 = arith.constant 0 : index
    %493 = vector.load %arg3[%c1_466, %c3_467, %c6_468, %c0_469, %c0_470] : memref<2x4x9x8x8xf32, #tpu.memory_space<vmem>>, vector<1x1x1x8x8xf32>
    %494 = vector.shape_cast %493 : vector<1x1x1x8x8xf32> to vector<8x8xf32>
    %495 = vector.extract_strided_slice %494 {offsets = [0, 0], sizes = [2, 8], strides = [1, 1]} : vector<8x8xf32> to vector<2x8xf32>
    %cst_471 = arith.constant dense<0.000000e+00> : vector<2x256xf32>
    %496 = tpu.matmul %495, %453, %cst_471 {dimension_numbers = #tpu.dot_dimension_numbers<[1], [0], [0], [1], [0, 0, 1, 1], [], []>} : vector<2x8xf32>, vector<8x256xf32>, vector<2x256xf32> -> vector<2x256xf32>
    %497 = arith.addf %492, %496 : vector<2x256xf32>
    %c1_472 = arith.constant 1 : index
    %c3_473 = arith.constant 3 : index
    %c7_474 = arith.constant 7 : index
    %c0_475 = arith.constant 0 : index
    %c0_476 = arith.constant 0 : index
    %498 = vector.load %arg3[%c1_472, %c3_473, %c7_474, %c0_475, %c0_476] : memref<2x4x9x8x8xf32, #tpu.memory_space<vmem>>, vector<1x1x1x8x8xf32>
    %499 = vector.shape_cast %498 : vector<1x1x1x8x8xf32> to vector<8x8xf32>
    %500 = vector.extract_strided_slice %499 {offsets = [0, 0], sizes = [2, 8], strides = [1, 1]} : vector<8x8xf32> to vector<2x8xf32>
    %cst_477 = arith.constant dense<0.000000e+00> : vector<2x256xf32>
    %501 = tpu.matmul %500, %457, %cst_477 {dimension_numbers = #tpu.dot_dimension_numbers<[1], [0], [0], [1], [0, 0, 1, 1], [], []>} : vector<2x8xf32>, vector<8x256xf32>, vector<2x256xf32> -> vector<2x256xf32>
    %502 = arith.addf %497, %501 : vector<2x256xf32>
    %c1_478 = arith.constant 1 : index
    %c3_479 = arith.constant 3 : index
    %c8_480 = arith.constant 8 : index
    %c0_481 = arith.constant 0 : index
    %c0_482 = arith.constant 0 : index
    %503 = vector.load %arg3[%c1_478, %c3_479, %c8_480, %c0_481, %c0_482] : memref<2x4x9x8x8xf32, #tpu.memory_space<vmem>>, vector<1x1x1x8x8xf32>
    %504 = vector.shape_cast %503 : vector<1x1x1x8x8xf32> to vector<8x8xf32>
    %505 = vector.extract_strided_slice %504 {offsets = [0, 0], sizes = [2, 8], strides = [1, 1]} : vector<8x8xf32> to vector<2x8xf32>
    %cst_483 = arith.constant dense<0.000000e+00> : vector<2x256xf32>
    %506 = tpu.matmul %505, %461, %cst_483 {dimension_numbers = #tpu.dot_dimension_numbers<[1], [0], [0], [1], [0, 0, 1, 1], [], []>} : vector<2x8xf32>, vector<8x256xf32>, vector<2x256xf32> -> vector<2x256xf32>
    %507 = arith.addf %502, %506 : vector<2x256xf32>
    %c1_484 = arith.constant 1 : index
    %c3_485 = arith.constant 3 : index
    %c0_486 = arith.constant 0 : index
    %c0_487 = arith.constant 0 : index
    %508 = vector.load %arg4[%c1_484, %c3_485, %c0_486, %c0_487] : memref<2x4x8x1xf32, #tpu.memory_space<vmem>>, vector<1x1x8x1xf32>
    %509 = vector.shape_cast %508 : vector<1x1x8x1xf32> to vector<8x1xf32>
    %510 = vector.extract_strided_slice %509 {offsets = [0, 0], sizes = [2, 1], strides = [1, 1]} : vector<8x1xf32> to vector<2x1xf32>
    %511 = vector.broadcast %510 : vector<2x1xf32> to vector<2x256xf32>
    %512 = arith.addf %507, %511 : vector<2x256xf32>
    %513 = arith.addf %512, %343 : vector<2x256xf32>
    %514 = vector.extract_strided_slice %513 {offsets = [0, 0], sizes = [1, 256], strides = [1, 1]} : vector<2x256xf32> to vector<1x256xf32>
    %c0_488 = arith.constant 0 : index
    %c0_489 = arith.constant 0 : index
    %c0_490 = arith.constant 0 : index
    %515 = vector.load %arg5[%c0_488, %c0_489, %c0_490] : memref<1x1x256xf32, #tpu.memory_space<vmem>>, vector<1x1x256xf32>
    %516 = vector.shape_cast %515 : vector<1x1x256xf32> to vector<1x256xf32>
    %517 = vector.shape_cast %514 : vector<1x256xf32> to vector<1x1x256xf32>
    tpu.vector_store %arg5[%c0_488, %c0_489, %c0_490], %517 {strides = array<i32>} : memref<1x1x256xf32, #tpu.memory_space<vmem>>, vector<1x1x256xf32>,
    return
  }
  func.func @transform_0(%arg0: i32) -> (i32, i32, i32) {
    %c0_i32 = arith.constant 0 : i32
    %c0_i32_0 = arith.constant 0 : i32
    %c0_i32_1 = arith.constant 0 : i32
    return %arg0, %c0_i32, %c0_i32_0 : i32, i32, i32
  }
  func.func @transform_1(%arg0: i32) -> (i32, i32) {
    %c0_i32 = arith.constant 0 : i32
    %c0_i32_0 = arith.constant 0 : i32
    %c0_i32_1 = arith.constant 0 : i32
    return %c0_i32, %c0_i32_0 : i32, i32
  }
  func.func @transform_2(%arg0: i32) -> (i32, i32, i32, i32, i32) {
    %c0_i32 = arith.constant 0 : i32
    %c0_i32_0 = arith.constant 0 : i32
    %c0_i32_1 = arith.constant 0 : i32
    %c0_i32_2 = arith.constant 0 : i32
    %c0_i32_3 = arith.constant 0 : i32
    %c0_i32_4 = arith.constant 0 : i32
    return %c0_i32, %c0_i32_0, %c0_i32_1, %c0_i32_2, %c0_i32_3 : i32, i32, i32, i32, i32
  }
  func.func @transform_3(%arg0: i32) -> (i32, i32, i32, i32) {
    %c0_i32 = arith.constant 0 : i32
    %c0_i32_0 = arith.constant 0 : i32
    %c0_i32_1 = arith.constant 0 : i32
    %c0_i32_2 = arith.constant 0 : i32
    %c0_i32_3 = arith.constant 0 : i32
    return %c0_i32, %c0_i32_0, %c0_i32_1, %c0_i32_2 : i32, i32, i32, i32
  }
  func.func @transform_4(%arg0: i32) -> (i32, i32, i32) {
    %c0_i32 = arith.constant 0 : i32
    %c0_i32_0 = arith.constant 0 : i32
    %c0_i32_1 = arith.constant 0 : i32
    return %arg0, %c0_i32, %c0_i32_0 : i32, i32, i32
  }
}

</mosaic_0001>

<bundles_post_ra>
// kernel: architecture_forward_pallas.1
= control target key start
LH: loop header
LB: loop body
LE: loop exit
PB: predicated region body
PF: predicated region fallthrough
CT: control target
= control target key end

     0   :  { %s5513_s15 = smov 0   ;;  %s6409_s0 = inlined_call_operand.vmem [shape: f32[2,1,256], index: 0, kind: input, shape index: {}]   ;;  %s6410_s1 = inlined_call_operand.vmem [shape: f32[9,256], index: 1, kind: input, shape index: {}]   ;;  %s6411_s2 = inlined_call_operand.vmem [shape: f32[2,4,9,8,8], index: 2, kind: input, shape index: {}]   ;;  %s6412_s3 = inlined_call_operand.vmem [shape: f32[2,4,8,1], index: 3, kind: input, shape index: {}]   ;;  %s6413_s4 = inlined_call_operand.vmem [shape: f32[2,1,256], index: 4, kind: output, shape index: {}]  }
   0x1 LB: > { %s5173_s16 = sadd.s32 4294967295, %s5474_s15   ;;  %p5177_p0 = scmp.ge.s32.totalorder %s5474_s15, 1  ;;  %s5474_s15 = sphi %s5513_s15, %s14_s15  }
   0x2   : > { %p161_p1 = scmp.lt.s32.totalorder %s5474_s15, 3 }
   0x4   : > { %p162_p2 = pnand %p5177_p0, %p161_p1 }
   0x5   : > { %p185_p3 = scmp.lt.s32.totalorder (!%p162_p2), %s5173_s16, 1  ;;  %v195_v0 = vlaneseq (!%p162_p2)  ;;  %vm205_vm0 = vcmask (!%p162_p2), 1042432   ;;  %v5476_v5 = vmov (!%p162_p2), 0.0   ;;  %s5477_s21 = smov (!%p162_p2), 17   ;;  %v1138_v10 = vld [vmem:[%s6412_s3] sm:$0xff] (!%p162_p2)  ;;  %v5485_v11 = vmov (!%p162_p2), 0  }
   0x6   : > { %165 = sbr.rel (%p162_p2) target bundleno = 2035 (0x7f3), region = 36  ;;  %463 = vmatprep.mubr.f32.mxu0 (!%p162_p2), %v5476_v5  ;;  %1590 = vmatprep.mubr.f32.mxu1 (!%p162_p2), %v5476_v5  ;;  %s5478_s22 = smov (!%p162_p2), 16   ;;  %v217_v13 = vld [vmem:[%s6410_s1] ss:$8 sm:$0x3] (!%p162_p2)  ;;  %vm392_vm3 = vcmask (!%p162_p2), 1043456  }
   0x7   : > { %v5524_v1 = vshrl.u32 (!%p162_p2), %v195_v0, 7  ;;  %s5479_s23 = smov (!%p162_p2), 15   ;;  %s5480_s24 = smov (!%p162_p2), 1   ;;  %5466 = vset.pattern.permute.xlu0 (!%p162_p2), %v5485_v11  ;;  %5467 = vset.pattern.permute.xlu1 (!%p162_p2), %v5485_v11  ;;  %v5584_v12 = vand.u32 (!%p162_p2), 127, %v195_v0  ;;  %v5187_v33 = vld [vmem:[%s6411_s2 + $0x8] sm:$0xff] (!%p162_p2)  ;;  %vm388_vm5 = vcmask (!%p162_p2), 31744  }
   0x8   : > { %s5481_s25 = smov (!%p162_p2), 127   ;;  %s5482_s26 = smov (!%p162_p2), 113   ;;  %v5180_v14 = vld [vmem:[%s6410_s1 + $0x1] ss:$8 sm:$0x3] (!%p162_p2)  ;;  %v5194_v51 = vld [vmem:[%s6411_s2 + $0x10] sm:$0xff] (!%p162_p2) }
   0x9   : > { %v5528_v2 = vsub.s32 (!%p162_p2), 0, %v5524_v1  ;;  %v5531_v3 = vsub.s32 (!%p162_p2), 1, %v5524_v1  ;;  %s5483_s27 = smov (!%p162_p2), 112   ;;  %s5484_s28 = smov (!%p162_p2), 111   ;;  %vm214_vm1 = vcmp.lt.s32.totalorder (!%p162_p2), %v5584_v12, 17  ;;  %vm235_vm2 = vcmp.lt.s32.totalorder (!%p162_p2), %v5584_v12, 16 }
   0xa   : > { %v5181_v21 = vld [vmem:[%s6410_s1 + $0x2] ss:$8 sm:$0x3] (!%p162_p2)  ;;  %vm257_vm4 = vcmp.lt.s32.totalorder (!%p162_p2), %v5584_v12, 15  ;;  %vm279_vm6 = vcmp.lt.s32.totalorder (!%p162_p2), %v5584_v12, 1  ;;  %vm301_vm7 = vcmp.lt.s32.totalorder (!%p162_p2), %v5584_v12, 127 }
   0xb   : > { %v5594_v17 = vrot.slane (!%p162_p2), %v217_v13, %v5531_v3  ;;  %v5598_v18 = vrot.slane (!%p162_p2), %v5180_v14, %v5528_v2  ;;  %v5601_v19 = vrot.slane (!%p162_p2), %v5180_v14, %v5531_v3  ;;  %v5604_v20 = vrot.slane (!%p162_p2), %v217_v13, %v5528_v2  ;;  %v5182_v37 = vld [vmem:[%s6410_s1 + $0x3] ss:$8 sm:$0x3] (!%p162_p2)  ;;  %v5183_v52 = vld [vmem:[%s6410_s1 + $0x5] ss:$8 sm:$0x3] (!%p162_p2) }
   0xc   : > { %v5622_v31 = vrot.slane (!%p162_p2), %v5181_v21, %v5531_v3  ;;  %v5641_v39 = vrot.slane (!%p162_p2), %v5181_v21, %v5528_v2  ;;  %v5648_v42 = vrot.slane (!%p162_p2), %v5182_v37, %v5531_v3  ;;  %v385_v46 = vld [vmem:[%s6411_s2] sm:$0xff] (!%p162_p2)  ;;  %v5660_v48 = vrot.slane (!%p162_p2), %v5182_v37, %v5528_v2  ;;  %v5198_v57 = vld [vmem:[%s6411_s2 + $0x18] sm:$0xff] (!%p162_p2) }
   0xd   : > { %s6415_s16 = smov (!%p185_p3, %s5173_s16), 1  ;;  %v5680_v55 = vrot.slane %v5183_v52, %v5531_v3  ;;  %v5184_v59 = vld [vmem:[%s6410_s1 + $0x6] ss:$8 sm:$0x3]  ;;  %vm323_vm8 = vcmp.lt.s32.totalorder %v5584_v12, 113  ;;  %v5696_v62 = vrot.slane %v5183_v52, %v5528_v2  ;;  %vm345_vm9 = vcmp.lt.s32.totalorder %v5584_v12, 112 }
   0xe   : > { %s5178_s17 = sshll.u32 %s6415_s16, 1  ;;  %v5719_v14 = vrot.slane %v5184_v59, %v5528_v2  ;;  %vm367_vm10 = vcmp.lt.s32.totalorder %v5584_v12, 111  ;;  %vm1216_vm11 = vcmask 64512   ;;  %vm1958_vm12 = vcmask 23552  }
   0xf   : > { %s188_s20 = scalar_lea.vmem %s6409_s0, %s5178_s17  ;;  %vm5486_vm13 = vmmov 0   ;;  %vm3494_vm14 = vcmask 1041408   ;;  %v5487_v12 = vmov 1966171168   ;;  %s192_s13 = scalar_lea.vmem %s6413_s4, %s5178_s17  ;;  %vm5117_vm15 = vcmp.lt.s32.totalorder %v195_v0, 256 }
  0x10   : > { %v193_v4 = vld [vmem:[%s188_s20] sm:$0x3] }
  0x11   : > { %v198_v6 = vrot.slane %v193_v4, %v5528_v2  ;;  %v202_v7 = vrot.slane %v193_v4, %v5531_v3  ;;  %v5703_v4 = vrot.slane %v5184_v59, %v5531_v3 }
  0x13   : > { %v5543_v8 = vsel %vm205_vm0, 0.0, %v198_v6  ;;  %v5550_v9 = vsel %vm205_vm0, 0.0, %v202_v7 }
  0x14   : > { %208 = vrot.lane.b32.xlu1 %v5543_v8, %s5477_s21  ;;  %231 = vrot.lane.b32.xlu0 %v5543_v8, %s5478_s22 }
  0x18   : > { %210 = vrot.lane.b32.xlu1 %v5550_v9, %s5477_s21  ;;  %233 = vrot.lane.b32.xlu0 %v5550_v9, %s5478_s22 }
  0x1c   : > { %255 = vrot.lane.b32.xlu1 %v5550_v9, %s5479_s23  ;;  %253 = vrot.lane.b32.xlu0 %v5543_v8, %s5479_s23 }
  0x20   : > { %277 = vrot.lane.b32.xlu1 %v5550_v9, %s5480_s24  ;;  %275 = vrot.lane.b32.xlu0 %v5543_v8, %s5480_s24 }
  0x24   : > { %299 = vrot.lane.b32.xlu1 %v5550_v9, %s5481_s25  ;;  %297 = vrot.lane.b32.xlu0 %v5543_v8, %s5481_s25 }
  0x28   : > { %321 = vrot.lane.b32.xlu1 %v5550_v9, %s5482_s26  ;;  %319 = vrot.lane.b32.xlu0 %v5543_v8, %s5482_s26 }
  0x2c   : > { %343 = vrot.lane.b32.xlu1 %v5550_v9, %s5483_s27  ;;  %341 = vrot.lane.b32.xlu0 %v5543_v8, %s5483_s27 }
  0x30   : > { %365 = vrot.lane.b32.xlu1 %v5550_v9, %s5484_s28  ;;  %363 = vrot.lane.b32.xlu0 %v5543_v8, %s5484_s28 }
  0x34   : > { %1141 = vperm.xlu0 %5466, %v1138_v10   ;;  %v5185_v10 = vld [vmem:[%s6410_s1 + $0x7] ss:$8 sm:$0x3] }
  0x86   : > { %v209_v15 = vpop.permute.xlu1 %208  ;;  %v232_v16 = vpop.permute.xlu0 %231 }
  0x8a   : > { %v211_v22 = vpop.permute.xlu1 %210  ;;  %v234_v23 = vpop.permute.xlu0 %233 }
  0x8b   : > { %v215_v24 = vsel %vm214_vm1, %v209_v15, %v211_v22  ;;  %v216_v25 = vsel %vm214_vm1, %v211_v22, %v209_v15  ;;  %v236_v26 = vsel %vm235_vm2, %v232_v16, %v234_v23  ;;  %v237_v27 = vsel %vm235_vm2, %v234_v23, %v232_v16  ;;  %v5206_v23 = vld [vmem:[%s6411_s2 + $0x28] sm:$0xff] }
  0x8c   : > { %v230_v28 = vmul.f32 %v5594_v17, %v215_v24  ;;  %v251_v29 = vmul.f32 %v5598_v18, %v237_v27  ;;  %v252_v30 = vmul.f32 %v5601_v19, %v236_v26  ;;  %v229_v32 = vmul.f32 %v5604_v20, %v216_v25  ;;  %v5186_v25 = vld [vmem:[%s6410_s1 + $0x10] ss:$8 sm:$0x3] }
  0x8d   : > { %v5726_v16 = vrot.slane %v5185_v10, %v5531_v3 }
  0x8e   : > { %5188 = vmatprep.subr.msk.mxu0 %vm392_vm3, %v252_v30  ;;  %v256_v34 = vpop.permute.xlu1 %255  ;;  %v254_v35 = vpop.permute.xlu0 %253  ;;  %v5749_v30 = vrot.slane %v5186_v25, %v5531_v3 }
  0x8f   : > { %5189 = vmatpush1.msk.msra.mxu0 %vm392_vm3, %v251_v29  ;;  %v258_v36 = vsel %vm257_vm4, %v254_v35, %v256_v34  ;;  %v259_v40 = vsel %vm257_vm4, %v256_v34, %v254_v35  ;;  %v5210_v34 = vld [vmem:[%s6411_s2 + $0x30] sm:$0xff] }
  0x90   : > { %5190 = vmatmul.mubr.msk.f32.vlgmr.msra.gmra.mrb[0].mxu0 %vm388_vm5, %v5187_v33  ;;  %5191 = vmatprep.subr.msk.mxu0 %vm392_vm3, %v230_v28  ;;  %v274_v38 = vmul.f32 %v5622_v31, %v258_v36  ;;  %v273_v45 = vmul.f32 %v5641_v39, %v259_v40  ;;  %v5742_v28 = vrot.slane %v5185_v10, %v5528_v2 }
  0x91   : > { %5192 = vmatpush1.msk.msra.mxu0 %vm392_vm3, %v229_v32  ;;  %543 = vmatprep.mubr.f32.mxu0 %v5476_v5  ;;  %v5761_v36 = vrot.slane %v5186_v25, %v5528_v2  ;;  %v5218_v2 = vld [vmem:[%s6411_s2 + $0x40] sm:$0xff] }
  0x92   : > { %5195 = vmatprep.subr.msk.mxu0 %vm392_vm3, %v274_v38  ;;  %v278_v41 = vpop.permute.xlu1 %277  ;;  %v276_v43 = vpop.permute.xlu0 %275  ;;  %v5214_v38 = vld [vmem:[%s6411_s2 + $0x38] sm:$0xff] }
  0x93   : > { %v280_v44 = vsel %vm279_vm6, %v276_v43, %v278_v41  ;;  %v281_v49 = vsel %vm279_vm6, %v278_v41, %v276_v43 }
  0x94   : > { %v296_v47 = vmul.f32 %v5648_v42, %v280_v44  ;;  %v295_v50 = vmul.f32 %v5660_v48, %v281_v49  ;;  %v5230_v49 = vld [vmem:[%s6411_s2 + $0x68] sm:$0xff] }
  0x96   : > { %v300_v53 = vpop.permute.xlu1 %299  ;;  %v298_v54 = vpop.permute.xlu0 %297 }
  0x97   : > { %v303_v56 = vsel %vm301_vm7, %v300_v53, %v298_v54  ;;  %v302_v63 = vsel %vm301_vm7, %v298_v54, %v300_v53 }
  0x98   : > { %5193 = vmatmul.mubr.msk.f32.vlgmr.msra.gmra.mrb[0].mxu0 %vm388_vm5, %v385_v46  ;;  %v318_v58 = vmul.f32 %v5680_v55, %v303_v56  ;;  %v317_v7 = vmul.f32 %v5696_v62, %v302_v63 }
  0x99   : > { %5196 = vmatpush1.msk.msra.mxu0 %vm392_vm3, %v273_v45  ;;  %625 = vmatprep.mubr.f32.mxu0 %v5476_v5 }
  0x9a   : > { %5199 = vmatprep.subr.msk.mxu0 %vm392_vm3, %v296_v47  ;;  %v322_v60 = vpop.permute.xlu1 %321  ;;  %v320_v61 = vpop.permute.xlu0 %319 }
  0x9b   : > { %v325_v6 = vsel %vm323_vm8, %v322_v60, %v320_v61  ;;  %v324_v15 = vsel %vm323_vm8, %v320_v61, %v322_v60  ;;  %v5223_v60 = vld [vmem:[%s6411_s2 + $0x50] sm:$0xff] }
  0x9c   : > { %v339_v22 = vmul.f32 %v5719_v14, %v324_v15 }
  0x9e   : > { %v344_v11 = vpop.permute.xlu1 %343  ;;  %v342_v13 = vpop.permute.xlu0 %341 }
  0x9f   : > { %v347_v21 = vsel %vm345_vm9, %v344_v11, %v342_v13  ;;  %v346_v29 = vsel %vm345_vm9, %v342_v13, %v344_v11 }
  0xa0   : > { %5197 = vmatmul.mubr.msk.f32.vlgmr.msra.gmra.mrb[0].mxu0 %vm388_vm5, %v5194_v51  ;;  %v362_v24 = vmul.f32 %v5726_v16, %v347_v21  ;;  %v361_v33 = vmul.f32 %v5742_v28, %v346_v29 }
  0xa1   : > { %5200 = vmatpush1.msk.msra.mxu0 %vm392_vm3, %v295_v50  ;;  %709 = vmatprep.mubr.f32.mxu0 %v5476_v5  ;;  %v5275_v50 = vld [vmem:[%s6412_s3 + $0x10] sm:$0xff] }
  0xa2   : > { %5203 = vmatprep.subr.msk.mxu0 %vm392_vm3, %v5550_v9  ;;  %v340_v9 = vmul.f32 %v5703_v4, %v325_v6  ;;  %v366_v26 = vpop.permute.xlu1 %365  ;;  %v364_v27 = vpop.permute.xlu0 %363 }
  0xa3   : > { %v369_v32 = vsel %vm367_vm10, %v366_v26, %v364_v27  ;;  %v368_v3 = vsel %vm367_vm10, %v364_v27, %v366_v26 }
  0xa4   : > { %v384_v35 = vmul.f32 %v5749_v30, %v369_v32  ;;  %v383_v37 = vmul.f32 %v5761_v36, %v368_v3 }
  0xa8   : > { %5201 = vmatmul.mubr.msk.f32.vlgmr.msra.gmra.mrb[0].mxu0 %vm388_vm5, %v5198_v57 }
  0xa9   : > { %5204 = vmatpush1.msk.msra.mxu0 %vm392_vm3, %v5543_v8  ;;  %793 = vmatprep.mubr.f32.mxu0 %v5476_v5  ;;  %v5202_v8 = vld [vmem:[%s6411_s2 + $0x20] sm:$0xff] }
  0xaa   : > { %5207 = vmatprep.subr.msk.mxu0 %vm392_vm3, %v318_v58 }
  0xb0   : > { %5205 = vmatmul.mubr.msk.f32.vlgmr.msra.gmra.mrb[0].mxu0 %vm388_vm5, %v5202_v8 }
  0xb1   : > { %5208 = vmatpush1.msk.msra.mxu0 %vm392_vm3, %v317_v7  ;;  %877 = vmatprep.mubr.f32.mxu0 %v5476_v5 }
  0xb2   : > { %5211 = vmatprep.subr.msk.mxu0 %vm392_vm3, %v340_v9 }
  0xb3   : > { %v1142_v40 = vpop.permute.xlu0 %1141 }
  0xb8   : > { %5209 = vmatmul.mubr.msk.f32.vlgmr.msra.gmra.mrb[0].mxu0 %vm388_vm5, %v5206_v23 }
  0xb9   : > { %5212 = vmatpush1.msk.msra.mxu0 %vm392_vm3, %v339_v22  ;;  %961 = vmatprep.mubr.f32.mxu0 %v5476_v5  ;;  %v5222_v22 = vld [vmem:[%s6411_s2 + $0x48] sm:$0xff] }
  0xba   : > { %5215 = vmatprep.subr.msk.mxu0 %vm392_vm3, %v362_v24 }
  0xc0   : > { %5213 = vmatmul.mubr.msk.f32.vlgmr.msra.gmra.mrb[0].mxu0 %vm388_vm5, %v5210_v34 }
  0xc1   : > { %5216 = vmatpush1.msk.msra.mxu0 %vm392_vm3, %v361_v33  ;;  %1045 = vmatprep.mubr.f32.mxu0 %v5476_v5  ;;  %v5232_v33 = vld [vmem:[%s6411_s2 + $0x70] sm:$0xff] }
  0xc2   : > { %5219 = vmatprep.subr.msk.mxu0 %vm392_vm3, %v384_v35 }
  0xc8   : > { %5217 = vmatmul.mubr.msk.f32.vlgmr.msra.gmra.mrb[0].mxu0 %vm388_vm5, %v5214_v38 }
  0xc9   : > { %5220 = vmatpush1.msk.msra.mxu0 %vm392_vm3, %v383_v37  ;;  %1129 = vmatprep.mubr.f32.mxu0 %v5476_v5 }
  0xd0   : > { %5221 = vmatmul.mubr.msk.f32.vlgmr.msra.gmra.mrb[0].mxu0 %vm388_vm5, %v5218_v2  ;;  %v5226_v2 = vld [vmem:[%s6411_s2 + $0x58] sm:$0xff] }
  0xd1   : > { %1284 = vmatprep.mubr.f32.mxu0 %v5476_v5 }
 0x1a3   : > { %v1131_v41 = vpop.f32.mrb[0].mxu0 }
 0x1a4   : > { %v1144_v43 = vadd.f32 %v1142_v40, %v1131_v41  ;;  %v1133_v44 = vpop.f32.mrb[1].mxu0 }
 0x1a5   : > { %v1145_v45 = vadd.f32 %v1142_v40, %v1133_v44 }
 0x1a6   : > { %v1146_v46 = vmax.f32 %v1144_v43, 0.0 }
 0x1a7   : > { %v1147_v47 = vmax.f32 %v1145_v45, 0.0 }
 0x1a8   : > { %1148 = vrot.lane.b32.xlu0 %v1146_v46, %s5477_s21  ;;  %1156 = vrot.lane.b32.xlu1 %v1146_v46, %s5478_s22 }
 0x1a9   : > { %1526 = vmatprep.subr.mxu1 %v1147_v47 }
 0x1aa   : > { %1527 = vmatpush1.msra.mxu1 %v1146_v46 }
 0x1ab   : > { %5231 = vmatmul.mubr.msk.f32.vlgmr.msra.gmra.mrb[0].mxu1 %vm1216_vm11, %v5230_v49 }
 0x1ac   : > { %1164 = vrot.lane.b32.xlu0 %v1146_v46, %s5479_s23  ;;  %1158 = vrot.lane.b32.xlu1 %v1147_v47, %s5478_s22 }
 0x1ad   : > { %1668 = vmatprep.mubr.f32.mxu1 %v5476_v5 }
 0x1b0   : > { %1180 = vrot.lane.b32.xlu0 %v1146_v46, %s5481_s25  ;;  %1150 = vrot.lane.b32.xlu1 %v1147_v47, %s5477_s21 }
 0x1b4   : > { %1172 = vrot.lane.b32.xlu0 %v1146_v46, %s5480_s24  ;;  %1166 = vrot.lane.b32.xlu1 %v1147_v47, %s5479_s23 }
 0x1b8   : > { %1188 = vrot.lane.b32.xlu0 %v1146_v46, %s5482_s26  ;;  %1182 = vrot.lane.b32.xlu1 %v1147_v47, %s5481_s25 }
 0x1bc   : > { %1926 = vrot.lane.b32.xlu0 %v5476_v5, %s5478_s22  ;;  %1174 = vrot.lane.b32.xlu1 %v1147_v47, %s5480_s24 }
 0x1c0   : > { %1198 = vrot.lane.b32.xlu0 %v1147_v47, %s5483_s27  ;;  %1190 = vrot.lane.b32.xlu1 %v1147_v47, %s5482_s26 }
 0x1c4   : > { %1204 = vrot.lane.b32.xlu0 %v1146_v46, %s5484_s28  ;;  %1196 = vrot.lane.b32.xlu1 %v1146_v46, %s5483_s27 }
 0x1c8   : > { %1930 = vrot.lane.b32.xlu0 %v5476_v5, %s5479_s23  ;;  %1922 = vrot.lane.b32.xlu1 %v5476_v5, %s5477_s21 }
 0x1cc   : > { %1934 = vrot.lane.b32.xlu0 %v5476_v5, %s5480_s24  ;;  %1206 = vrot.lane.b32.xlu1 %v1147_v47, %s5484_s28 }
 0x1d0   : > { %1946 = vrot.lane.b32.xlu0 %v5476_v5, %s5483_s27  ;;  %1938 = vrot.lane.b32.xlu1 %v5476_v5, %s5481_s25 }
 0x1d4   : > { %2708 = vperm.xlu0 %5466, %v5275_v50   ;;  %1942 = vrot.lane.b32.xlu1 %v5476_v5, %s5482_s26  ;;  %v5234_v50 = vld [vmem:[%s6411_s2 + $0x78] sm:$0xff] }
 0x1d8   : > { %1950 = vrot.lane.b32.xlu1 %v5476_v5, %s5484_s28 }
 0x21a   : > { %v1149_v51 = vpop.permute.xlu0 %1148  ;;  %v1157_v52 = vpop.permute.xlu1 %1156 }
 0x21e   : > { %v1165_v53 = vpop.permute.xlu0 %1164  ;;  %v1159_v54 = vpop.permute.xlu1 %1158 }
 0x21f   : > { %v1160_v56 = vsel %vm235_vm2, %v1157_v52, %v1159_v54  ;;  %v1161_v57 = vsel %vm235_vm2, %v1159_v54, %v1157_v52 }
 0x220   : > { %v1162_v58 = vmul.f32 %v1161_v57, %v5598_v18  ;;  %v1163_v59 = vmul.f32 %v1160_v56, %v5601_v19 }
 0x222   : > { %v1181_v61 = vpop.permute.xlu0 %1180  ;;  %1220 = vmatprep.subr.mxu0 %v1163_v59  ;;  %v1151_v63 = vpop.permute.xlu1 %1150 }
 0x223   : > { %v1152_v6 = vsel %vm214_vm1, %v1149_v51, %v1151_v63  ;;  %v1153_v7 = vsel %vm214_vm1, %v1151_v63, %v1149_v51  ;;  %1221 = vmatpush1.msra.mxu0 %v1162_v58  ;;  %v5228_v58 = vld [vmem:[%s6411_s2 + $0x60] sm:$0xff] }
 0x224   : > { %v1154_v8 = vmul.f32 %v1153_v7, %v5604_v20  ;;  %v1155_v9 = vmul.f32 %v1152_v6, %v5594_v17  ;;  %5224 = vmatmul.mubr.msk.f32.vlgmr.msra.gmra.mrb[2].mxu0 %vm1216_vm11, %v5223_v60  ;;  %v5236_v6 = vld [vmem:[%s6411_s2 + $0x80] sm:$0xff]  ;;  %v5242_v7 = vld [vmem:[%s6411_s2 + $0x98] sm:$0xff] }
 0x225   : > { %1358 = vmatprep.mubr.f32.mxu0 %v5476_v5 }
 0x226   : > { %v1173_v10 = vpop.permute.xlu0 %1172  ;;  %1294 = vmatprep.subr.mxu0 %v1155_v9  ;;  %v1167_v11 = vpop.permute.xlu1 %1166 }
 0x227   : > { %v1168_v13 = vsel %vm257_vm4, %v1165_v53, %v1167_v11  ;;  %1295 = vmatpush1.msra.mxu0 %v1154_v8  ;;  %v1169_v15 = vsel %vm257_vm4, %v1167_v11, %v1165_v53 }
 0x228   : > { %v1171_v21 = vmul.f32 %v1168_v13, %v5622_v31  ;;  %v1170_v25 = vmul.f32 %v1169_v15, %v5641_v39 }
 0x22a   : > { %v1189_v23 = vpop.permute.xlu0 %1188  ;;  %1370 = vmatprep.subr.mxu0 %v1171_v21  ;;  %v1183_v24 = vpop.permute.xlu1 %1182 }
 0x22b   : > { %v1184_v26 = vsel %vm301_vm7, %v1181_v61, %v1183_v24  ;;  %v1185_v27 = vsel %vm301_vm7, %v1183_v24, %v1181_v61  ;;  %v5238_v24 = vld [vmem:[%s6411_s2 + $0x88] sm:$0xff] }
 0x22c   : > { %v1186_v29 = vmul.f32 %v1184_v26, %v5696_v62  ;;  %v1187_v32 = vmul.f32 %v1185_v27, %v5680_v55  ;;  %5225 = vmatmul.mubr.msk.f32.vlgmr.msra.gmra.mrb[2].mxu0 %vm1216_vm11, %v5222_v22 }
 0x22d   : > { %1371 = vmatpush1.msra.mxu0 %v1170_v25  ;;  %1434 = vmatprep.mubr.f32.mxu0 %v5476_v5  ;;  %v5241_v25 = vld [vmem:[%s6411_s2 + $0x90] sm:$0xff] }
 0x22e   : > { %v1927_v34 = vpop.permute.xlu0 %1926  ;;  %v1175_v35 = vpop.permute.xlu1 %1174  ;;  %1604 = vmatprep.subr.mxu1 %v1187_v32 }
 0x22f   : > { %v1176_v3 = vsel %vm279_vm6, %v1173_v10, %v1175_v35  ;;  %1605 = vmatpush1.msra.mxu1 %v1186_v29  ;;  %v1177_v37 = vsel %vm279_vm6, %v1175_v35, %v1173_v10  ;;  %v1929_v40 = vmul.f32 %v1927_v34, %v5601_v19  ;;  %v1928_v57 = vmul.f32 %v1927_v34, %v5598_v18  ;;  %v5257_v34 = vld [vmem:[%s6411_s2 + $0xb0] sm:$0xff] }
 0x230   : > { %v1179_v38 = vmul.f32 %v1176_v3, %v5648_v42  ;;  %5233 = vmatmul.mubr.msk.f32.vlgmr.msra.gmra.mrb[0].mxu1 %vm1216_vm11, %v5232_v33  ;;  %v1178_v43 = vmul.f32 %v1177_v37, %v5660_v48 }
 0x231   : > { %1746 = vmatprep.mubr.f32.mxu1 %v5476_v5 }
 0x232   : > { %1448 = vmatprep.subr.mxu0 %v1179_v38  ;;  %v1191_v41 = vpop.permute.xlu1 %1190  ;;  %v1199_v46 = vpop.permute.xlu0 %1198  ;;  %v5249_v38 = vld [vmem:[%s6411_s2 + $0xa0] sm:$0xff] }
 0x233   : > { %v1192_v44 = vsel %vm323_vm8, %v1189_v23, %v1191_v41  ;;  %v1193_v45 = vsel %vm323_vm8, %v1191_v41, %v1189_v23 }
 0x234   : > { %v1194_v47 = vmul.f32 %v1192_v44, %v5719_v14  ;;  %v1195_v49 = vmul.f32 %v1193_v45, %v5703_v4  ;;  %5227 = vmatmul.mubr.msk.f32.vlgmr.msra.gmra.mrb[2].mxu0 %vm1216_vm11, %v5226_v2  ;;  %v5259_v2 = vld [vmem:[%s6411_s2 + $0xb8] sm:$0xff] }
 0x235   : > { %1449 = vmatpush1.msra.mxu0 %v1178_v43  ;;  %1512 = vmatprep.mubr.f32.mxu0 %v5476_v5 }
 0x236   : > { %v1197_v51 = vpop.permute.xlu1 %1196  ;;  %1682 = vmatprep.subr.mxu1 %v1195_v49  ;;  %5243 = vmatprep.subr.msk.mxu0 %vm205_vm0, %v1929_v40  ;;  %v1205_v59 = vpop.permute.xlu0 %1204 }
 0x237   : > { %v1200_v52 = vsel %vm345_vm9, %v1197_v51, %v1199_v46  ;;  %v1201_v53 = vsel %vm345_vm9, %v1199_v46, %v1197_v51  ;;  %1683 = vmatpush1.msra.mxu1 %v1194_v47  ;;  %v5263_v46 = vld [vmem:[%s6411_s2 + $0xc0] sm:$0xff]  ;;  %v5253_v47 = vld [vmem:[%s6411_s2 + $0xa8] sm:$0xff]  ;;  %v5271_v51 = vld [vmem:[%s6411_s2 + $0xd0] sm:$0xff] }
 0x238   : > { %v1202_v54 = vmul.f32 %v1200_v52, %v5742_v28  ;;  %v1203_v56 = vmul.f32 %v1201_v53, %v5726_v16  ;;  %5235 = vmatmul.mubr.msk.f32.vlgmr.msra.gmra.mrb[0].mxu1 %vm1216_vm11, %v5234_v50  ;;  %v5267_v50 = vld [vmem:[%s6411_s2 + $0xc8] sm:$0xff] }
 0x239   : > { %1824 = vmatprep.mubr.f32.mxu1 %v5476_v5 }
 0x23a   : > { %v1923_v60 = vpop.permute.xlu1 %1922  ;;  %1760 = vmatprep.subr.mxu1 %v1203_v56  ;;  %v1931_v9 = vpop.permute.xlu0 %1930 }
 0x23b   : > { %v1925_v61 = vmul.f32 %v1923_v60, %v5594_v17  ;;  %1761 = vmatpush1.msra.mxu1 %v1202_v54  ;;  %v1924_v63 = vmul.f32 %v1923_v60, %v5604_v20  ;;  %v1933_v13 = vmul.f32 %v1931_v9, %v5622_v31  ;;  %v1932_v23 = vmul.f32 %v1931_v9, %v5641_v39 }
 0x23c   : > { %5229 = vmatmul.mubr.msk.f32.vlgmr.msra.gmra.mrb[2].mxu0 %vm1216_vm11, %v5228_v58 }
 0x23d   : > { %5244 = vmatpush1.msk.msra.mxu0 %vm205_vm0, %v1928_v57  ;;  %2032 = vmatprep.mubr.f32.mxu0 %v5476_v5 }
 0x23e   : > { %v1207_v8 = vpop.permute.xlu1 %1206  ;;  %5246 = vmatprep.subr.msk.mxu0 %vm205_vm0, %v1925_v61  ;;  %v1935_v26 = vpop.permute.xlu0 %1934 }
 0x23f   : > { %v1208_v10 = vsel %vm367_vm10, %v1205_v59, %v1207_v8  ;;  %v1209_v11 = vsel %vm367_vm10, %v1207_v8, %v1205_v59  ;;  %v1937_v27 = vmul.f32 %v1935_v26, %v5648_v42  ;;  %v1936_v37 = vmul.f32 %v1935_v26, %v5660_v48 }
 0x240   : > { %v1210_v15 = vmul.f32 %v1208_v10, %v5761_v36  ;;  %v1211_v21 = vmul.f32 %v1209_v11, %v5749_v30  ;;  %5237 = vmatmul.mubr.msk.f32.vlgmr.msra.gmra.mrb[0].mxu1 %vm1216_vm11, %v5236_v6  ;;  %5245 = vmatmul.mubr.msk.f32.vlgmr.msra.gmra.mrb[4].mxu0 %vm1958_vm12, %v5242_v7 }
 0x241   : > { %5247 = vmatpush1.msk.msra.mxu0 %vm205_vm0, %v1924_v63  ;;  %1902 = vmatprep.mubr.f32.mxu1 %v5476_v5 }
 0x242   : > { %1838 = vmatprep.subr.mxu1 %v1211_v21  ;;  %2112 = vmatprep.mubr.f32.mxu0 %v5476_v5  ;;  %v1939_v22 = vpop.permute.xlu1 %1938  ;;  %v1947_v40 = vpop.permute.xlu0 %1946 }
 0x243   : > { %1839 = vmatpush1.msra.mxu1 %v1210_v15  ;;  %5250 = vmatprep.subr.msk.mxu0 %vm205_vm0, %v1933_v13  ;;  %v1941_v29 = vmul.f32 %v1939_v22, %v5680_v55  ;;  %v1940_v33 = vmul.f32 %v1939_v22, %v5696_v62  ;;  %v1949_v43 = vmul.f32 %v1947_v40, %v5726_v16 }
 0x244   : > { %5355 = vmatprep.subr.mxu1 %v5476_v5  ;;  %v1948_v45 = vmul.f32 %v1947_v40, %v5742_v28 }
 0x246   : > { %v1943_v32 = vpop.permute.xlu1 %1942 }
 0x247   : > { %v1945_v35 = vmul.f32 %v1943_v32, %v5703_v4  ;;  %v1944_v41 = vmul.f32 %v1943_v32, %v5719_v14 }
 0x248   : > { %5239 = vmatmul.mubr.msk.f32.vlgmr.msra.gmra.mrb[0].mxu1 %vm1216_vm11, %v5238_v24  ;;  %5248 = vmatmul.mubr.msk.f32.vlgmr.msra.gmra.mrb[4].mxu0 %vm1958_vm12, %v5241_v25 }
 0x249   : > { %5251 = vmatpush1.msk.msra.mxu0 %vm205_vm0, %v1932_v23  ;;  %2194 = vmatprep.mubr.f32.mxu0 %v5476_v5 }
 0x24a   : > { %5356 = vmatpush3.msra.mxu1 %v5476_v5  ;;  %5357 = vmatprep.mubr.msk.f32.mxu1 %vm5486_vm13, %v5476_v5  ;;  %v1951_v3 = vpop.permute.xlu1 %1950 }
 0x24b   : > { %5254 = vmatprep.subr.msk.mxu0 %vm205_vm0, %v1937_v27  ;;  %5260 = vmatprep.subr.msk.mxu1 %vm205_vm0, %v1941_v29  ;;  %v1953_v44 = vmul.f32 %v1951_v3, %v5749_v30  ;;  %v1952_v49 = vmul.f32 %v1951_v3, %v5761_v36 }
 0x24c   : > { %5358 = vmatmul.mubr.msk.f32.vlgmr.msra.gmra.mrb[2].mxu1 %vm1958_vm12, %v5257_v34 }
 0x24d   : > { %5261 = vmatpush1.msk.msra.mxu1 %vm205_vm0, %v1940_v33  ;;  %2443 = vmatprep.mubr.f32.mxu1 %v5476_v5 }
 0x24e   : > { %5264 = vmatprep.subr.msk.mxu1 %vm205_vm0, %v1945_v35 }
 0x250   : > { %5252 = vmatmul.mubr.msk.f32.vlgmr.msra.gmra.mrb[4].mxu0 %vm1958_vm12, %v5249_v38  ;;  %5262 = vmatmul.mubr.msk.f32.vlgmr.msra.gmra.mrb[4].mxu1 %vm1958_vm12, %v5259_v2  ;;  %v5294_v38 = vld [vmem:[%s6412_s3 + $0x18] sm:$0xff]  ;;  %v5240_v2 = vld [vmem:[%s6412_s3 + $0x8] sm:$0xff] }
 0x251   : > { %5255 = vmatpush1.msk.msra.mxu0 %vm205_vm0, %v1936_v37  ;;  %2278 = vmatprep.mubr.f32.mxu0 %v5476_v5 }
 0x252   : > { %5265 = vmatpush1.msk.msra.mxu1 %vm205_vm0, %v1944_v41  ;;  %2527 = vmatprep.mubr.f32.mxu1 %v5476_v5 }
 0x253   : > { %5268 = vmatprep.subr.msk.mxu1 %vm205_vm0, %v1949_v43  ;;  %5272 = vmatprep.subr.msk.mxu0 %vm205_vm0, %v1953_v44  ;;  %v2709_v32 = vpop.permute.xlu0 %2708 }
 0x254   : > { %5266 = vmatmul.mubr.msk.f32.vlgmr.msra.gmra.mrb[6].mxu1 %vm1958_vm12, %v5263_v46 }
 0x255   : > { %5269 = vmatpush1.msk.msra.mxu1 %vm205_vm0, %v1948_v45  ;;  %2611 = vmatprep.mubr.f32.mxu1 %v5476_v5 }
 0x258   : > { %5256 = vmatmul.mubr.msk.f32.vlgmr.msra.gmra.mrb[4].mxu0 %vm1958_vm12, %v5253_v47  ;;  %5270 = vmatmul.mubr.msk.f32.vlgmr.msra.gmra.mrb[8].mxu1 %vm1958_vm12, %v5267_v50 }
 0x259   : > { %5273 = vmatpush1.msk.msra.mxu0 %vm205_vm0, %v1952_v49  ;;  %2695 = vmatprep.mubr.f32.mxu0 %v5476_v5  ;;  %v5277_v49 = vld [vmem:[%s6411_s2 + $0xe0] sm:$0xff] }
 0x25a   : > { %2850 = vmatprep.mubr.f32.mxu1 %v5476_v5 }
 0x25c   : > { %5274 = vmatmul.mubr.msk.f32.vlgmr.msra.gmra.mrb[6].mxu0 %vm1958_vm12, %v5271_v51 }
 0x25d   : > { %3638 = vmatprep.mubr.f32.mxu0 %v5476_v5 }
 0x30f   : > { %v1514_v52 = vpop.f32.mrb[2].mxu0 }
 0x310   : > { %v1516_v53 = vpop.f32.mrb[3].mxu0 }
 0x31b   : > { %v1904_v54 = vpop.f32.mrb[0].mxu1 }
 0x31c   : > { %v5986_v56 = vadd.f32 %v1904_v54, %v1514_v52  ;;  %v1906_v57 = vpop.f32.mrb[1].mxu1 }
 0x31d   : > { %v5988_v58 = vadd.f32 %v1906_v57, %v1516_v53 }
 0x31f   : > { %v2361_v59 = vpop.f32.mrb[2].mxu1 }
 0x320   : > { %v5359_v60 = vpop.f32.mrb[3].mxu1 }
 0x323   : > { %v2445_v61 = vpop.f32.mrb[4].mxu1 }
 0x324   : > { %v2447_v63 = vpop.f32.mrb[5].mxu1 }
 0x327   : > { %v2529_v6 = vpop.f32.mrb[6].mxu1 }
 0x328   : > { %v2531_v7 = vpop.f32.mrb[7].mxu1 }
 0x32b   : > { %v2280_v8 = vpop.f32.mrb[4].mxu0  ;;  %v2613_v9 = vpop.f32.mrb[8].mxu1 }
 0x32c   : > { %v2366_v10 = vadd.f32 %v2361_v59, %v2280_v8  ;;  %v2282_v11 = vpop.f32.mrb[5].mxu0  ;;  %v2615_v13 = vpop.f32.mrb[9].mxu1 }
 0x32d   : > { %v2451_v15 = vadd.f32 %v2447_v63, %v2282_v11 }
 0x32e   : > { %v2450_v21 = vadd.f32 %v2445_v61, %v2366_v10 }
 0x32f   : > { %v2535_v22 = vadd.f32 %v2531_v7, %v2451_v15  ;;  %v2697_v23 = vpop.f32.mrb[6].mxu0  ;;  %v5276_v7 = vld [vmem:[%s6411_s2 + $0xd8] sm:$0xff]  ;;  %v5280_v15 = vld [vmem:[%s6411_s2 + $0xe8] sm:$0xff] }
 0x330   : > { %v2534_v24 = vadd.f32 %v2529_v6, %v2450_v21  ;;  %v2699_v25 = vpop.f32.mrb[7].mxu0 }
 0x331   : > { %v2619_v26 = vadd.f32 %v2615_v13, %v2535_v22 }
 0x332   : > { %v2618_v27 = vadd.f32 %v2613_v9, %v2534_v24 }
 0x333   : > { %v2703_v29 = vadd.f32 %v2699_v25, %v2619_v26  ;;  %v5282_v25 = vld [vmem:[%s6411_s2 + $0xf0] sm:$0xff] }
 0x334   : > { %v2702_v33 = vadd.f32 %v2697_v23, %v2618_v27 }
 0x335   : > { %v2712_v34 = vadd.f32 %v2709_v32, %v2703_v29 }
 0x336   : > { %v2711_v35 = vadd.f32 %v2709_v32, %v2702_v33 }
 0x337   : > { %v5990_v3 = vmax.f32 %v2712_v34, 0.0  ;;  %v5284_v34 = vld [vmem:[%s6411_s2 + $0xf8] sm:$0xff] }
 0x338   : > { %v5992_v37 = vmax.f32 %v2711_v35, 0.0 }
 0x339   : > { %2725 = vrot.lane.b32.xlu0 %v5990_v3, %s5478_s22 }
 0x33a   : > { %2723 = vrot.lane.b32.xlu1 %v5992_v37, %s5478_s22 }
 0x33d   : > { %2717 = vrot.lane.b32.xlu0 %v5990_v3, %s5477_s21 }
 0x33e   : > { %2715 = vrot.lane.b32.xlu1 %v5992_v37, %s5477_s21 }
 0x341   : > { %2733 = vrot.lane.b32.xlu0 %v5990_v3, %s5479_s23 }
 0x342   : > { %2731 = vrot.lane.b32.xlu1 %v5992_v37, %s5479_s23 }
 0x345   : > { %2741 = vrot.lane.b32.xlu0 %v5990_v3, %s5480_s24 }
 0x346   : > { %2739 = vrot.lane.b32.xlu1 %v5992_v37, %s5480_s24 }
 0x349   : > { %2749 = vrot.lane.b32.xlu0 %v5990_v3, %s5481_s25 }
 0x34a   : > { %2747 = vrot.lane.b32.xlu1 %v5992_v37, %s5481_s25 }
 0x34d   : > { %2757 = vrot.lane.b32.xlu0 %v5990_v3, %s5482_s26 }
 0x34e   : > { %2755 = vrot.lane.b32.xlu1 %v5992_v37, %s5482_s26 }
 0x351   : > { %2765 = vrot.lane.b32.xlu0 %v5990_v3, %s5483_s27 }
 0x352   : > { %2763 = vrot.lane.b32.xlu1 %v5992_v37, %s5483_s27 }
 0x355   : > { %2773 = vrot.lane.b32.xlu0 %v5990_v3, %s5484_s28 }
 0x356   : > { %2771 = vrot.lane.b32.xlu1 %v5992_v37, %s5484_s28 }
 0x359   : > { %3481 = vperm.xlu0 %5466, %v5294_v38  }
 0x35a   : > { %1915 = vperm.xlu1 %5467, %v5240_v2  }
 0x3ab   : > { %v2726_v40 = vpop.permute.xlu0 %2725 }
 0x3ac   : > { %v2724_v41 = vpop.permute.xlu1 %2723 }
 0x3ad   : > { %v2727_v43 = vsel %vm235_vm2, %v2724_v41, %v2726_v40  ;;  %v2728_v44 = vsel %vm235_vm2, %v2726_v40, %v2724_v41  ;;  %v5286_v41 = vld [vmem:[%s6411_s2 + $0x100] sm:$0xff] }
 0x3ae   : > { %v2729_v45 = vmul.f32 %v2728_v44, %v5598_v18  ;;  %v2730_v46 = vmul.f32 %v2727_v43, %v5601_v19 }
 0x3af   : > { %v2718_v47 = vpop.permute.xlu0 %2717 }
 0x3b0   : > { %v2716_v50 = vpop.permute.xlu1 %2715  ;;  %2786 = vmatprep.subr.mxu1 %v2730_v46 }
 0x3b1   : > { %v2719_v51 = vsel %vm214_vm1, %v2716_v50, %v2718_v47  ;;  %v2720_v52 = vsel %vm214_vm1, %v2718_v47, %v2716_v50  ;;  %2787 = vmatpush1.msra.mxu1 %v2729_v45  ;;  %v5288_v50 = vld [vmem:[%s6411_s2 + $0x108] sm:$0xff] }
 0x3b2   : > { %v2721_v53 = vmul.f32 %v2720_v52, %v5604_v20  ;;  %v2722_v54 = vmul.f32 %v2719_v51, %v5594_v17  ;;  %5278 = vmatmul.mubr.msk.f32.vlgmr.msra.gmra.mrb[10].mxu1 %vm1216_vm11, %v5277_v49 }
 0x3b3   : > { %v2734_v57 = vpop.permute.xlu0 %2733  ;;  %2924 = vmatprep.mubr.f32.mxu1 %v5476_v5 }
 0x3b4   : > { %v2732_v59 = vpop.permute.xlu1 %2731  ;;  %2860 = vmatprep.subr.mxu1 %v2722_v54  ;;  %v5290_v54 = vld [vmem:[%s6411_s2 + $0x110] sm:$0xff] }
 0x3b5   : > { %v2735_v60 = vsel %vm257_vm4, %v2732_v59, %v2734_v57  ;;  %2861 = vmatpush1.msra.mxu1 %v2721_v53  ;;  %v2736_v61 = vsel %vm257_vm4, %v2734_v57, %v2732_v59  ;;  %v5292_v59 = vld [vmem:[%s6411_s2 + $0x118] sm:$0xff] }
 0x3b6   : > { %v2738_v63 = vmul.f32 %v2735_v60, %v5622_v31  ;;  %v2737_v9 = vmul.f32 %v2736_v61, %v5641_v39 }
 0x3b7   : > { %v2742_v6 = vpop.permute.xlu0 %2741 }
 0x3b8   : > { %v2740_v8 = vpop.permute.xlu1 %2739  ;;  %2936 = vmatprep.subr.mxu1 %v2738_v63 }
 0x3b9   : > { %v2743_v10 = vsel %vm279_vm6, %v2740_v8, %v2742_v6  ;;  %v2744_v13 = vsel %vm279_vm6, %v2742_v6, %v2740_v8 }
 0x3ba   : > { %v2746_v11 = vmul.f32 %v2743_v10, %v5648_v42  ;;  %5279 = vmatmul.mubr.msk.f32.vlgmr.msra.gmra.mrb[10].mxu1 %vm1216_vm11, %v5276_v7  ;;  %v2745_v21 = vmul.f32 %v2744_v13, %v5660_v48 }
 0x3bb   : > { %2937 = vmatpush1.msra.mxu1 %v2737_v9  ;;  %3000 = vmatprep.mubr.f32.mxu1 %v5476_v5  ;;  %v2750_v22 = vpop.permute.xlu0 %2749 }
 0x3bc   : > { %3014 = vmatprep.subr.mxu1 %v2746_v11  ;;  %v2748_v23 = vpop.permute.xlu1 %2747 }
 0x3bd   : > { %v2752_v24 = vsel %vm301_vm7, %v2750_v22, %v2748_v23  ;;  %v2751_v32 = vsel %vm301_vm7, %v2748_v23, %v2750_v22 }
 0x3be   : > { %v2754_v26 = vmul.f32 %v2752_v24, %v5680_v55  ;;  %v2753_v35 = vmul.f32 %v2751_v32, %v5696_v62 }
 0x3bf   : > { %v2758_v27 = vpop.permute.xlu0 %2757 }
 0x3c0   : > { %v2756_v29 = vpop.permute.xlu1 %2755 }
 0x3c1   : > { %v2760_v33 = vsel %vm323_vm8, %v2758_v27, %v2756_v29  ;;  %v2759_v2 = vsel %vm323_vm8, %v2756_v29, %v2758_v27  ;;  %v5296_v29 = vld [vmem:[%s6411_s2 + $0x1b8] sm:$0xff] }
 0x3c2   : > { %5281 = vmatmul.mubr.msk.f32.vlgmr.msra.gmra.mrb[10].mxu1 %vm1216_vm11, %v5280_v15  ;;  %v2761_v43 = vmul.f32 %v2759_v2, %v5719_v14 }
 0x3c3   : > { %3015 = vmatpush1.msra.mxu1 %v2745_v21  ;;  %3078 = vmatprep.mubr.f32.mxu1 %v5476_v5 }
 0x3c4   : > { %3092 = vmatprep.subr.mxu1 %v5990_v3  ;;  %v2762_v3 = vmul.f32 %v2760_v33, %v5703_v4  ;;  %v2764_v38 = vpop.permute.xlu1 %2763 }
 0x3c8   : > { %v2772_v46 = vpop.permute.xlu1 %2771 }
 0x3ca   : > { %5283 = vmatmul.mubr.msk.f32.vlgmr.msra.gmra.mrb[10].mxu1 %vm1216_vm11, %v5282_v25 }
 0x3cb   : > { %3093 = vmatpush1.msra.mxu1 %v5992_v37  ;;  %3156 = vmatprep.mubr.f32.mxu1 %v5476_v5  ;;  %v2766_v37 = vpop.permute.xlu0 %2765 }
 0x3cc   : > { %3170 = vmatprep.subr.mxu1 %v2754_v26  ;;  %v2768_v40 = vsel %vm345_vm9, %v2766_v37, %v2764_v38  ;;  %v2767_v47 = vsel %vm345_vm9, %v2764_v38, %v2766_v37 }
 0x3cd   : > { %v2770_v44 = vmul.f32 %v2768_v40, %v5726_v16  ;;  %v2769_v51 = vmul.f32 %v2767_v47, %v5742_v28 }
 0x3cf   : > { %v2774_v45 = vpop.permute.xlu0 %2773 }
 0x3d0   : > { %v2776_v49 = vsel %vm367_vm10, %v2774_v45, %v2772_v46  ;;  %v2775_v53 = vsel %vm367_vm10, %v2772_v46, %v2774_v45 }
 0x3d1   : > { %v2778_v52 = vmul.f32 %v2776_v49, %v5749_v30  ;;  %v2777_v57 = vmul.f32 %v2775_v53, %v5761_v36 }
 0x3d2   : > { %5285 = vmatmul.mubr.msk.f32.vlgmr.msra.gmra.mrb[10].mxu1 %vm1216_vm11, %v5284_v34 }
 0x3d3   : > { %3171 = vmatpush1.msra.mxu1 %v2753_v35  ;;  %3234 = vmatprep.mubr.f32.mxu1 %v5476_v5 }
 0x3d4   : > { %3248 = vmatprep.subr.mxu1 %v2762_v3 }
 0x3d8   : > { %v3482_v6 = vpop.permute.xlu0 %3481 }
 0x3d9   : > { %v1916_v60 = vpop.permute.xlu1 %1915 }
 0x3da   : > { %5287 = vmatmul.mubr.msk.f32.vlgmr.msra.gmra.mrb[10].mxu1 %vm1216_vm11, %v5286_v41  ;;  %v1918_v61 = vadd.f32 %v5986_v56, %v1916_v60  ;;  %v1919_v63 = vadd.f32 %v5988_v58, %v1916_v60  ;;  %v5331_v56 = vld [vmem:[%s6412_s3 + $0x30] sm:$0xff] }
 0x3db   : > { %3249 = vmatpush1.msra.mxu1 %v2761_v43  ;;  %3312 = vmatprep.mubr.f32.mxu1 %v5476_v5 }
 0x3dc   : > { %3326 = vmatprep.subr.mxu1 %v2770_v44  ;;  %v3490_v8 = vrot.slane %v1918_v61, 6  ;;  %v3491_v11 = vrot.slane %v1919_v63, 6  ;;  %v5295_v44 = vld [vmem:[%s6411_s2 + $0x1b0] sm:$0xff] }
 0x3e2   : > { %5289 = vmatmul.mubr.msk.f32.vlgmr.msra.gmra.mrb[10].mxu1 %vm1216_vm11, %v5288_v50 }
 0x3e3   : > { %3327 = vmatpush1.msra.mxu1 %v2769_v51  ;;  %3390 = vmatprep.mubr.f32.mxu1 %v5476_v5  ;;  %v5303_v51 = vld [vmem:[%s6411_s2 + $0x1c0] sm:$0xff] }
 0x3e4   : > { %3404 = vmatprep.subr.mxu1 %v2778_v52 }
 0x3ea   : > { %5291 = vmatmul.mubr.msk.f32.vlgmr.msra.gmra.mrb[10].mxu1 %vm1216_vm11, %v5290_v54 }
 0x3eb   : > { %3405 = vmatpush1.msra.mxu1 %v2777_v57  ;;  %3468 = vmatprep.mubr.f32.mxu1 %v5476_v5 }
 0x3f2   : > { %5293 = vmatmul.mubr.msk.f32.vlgmr.msra.gmra.mrb[10].mxu1 %vm1216_vm11, %v5292_v59  ;;  %v5307_v59 = vld [vmem:[%s6411_s2 + $0x1c8] sm:$0xff] }
 0x3f3   : > { %4459 = vmatprep.mubr.f32.mxu1 %v5476_v5 }
 0x4c5   : > { %v3470_v7 = vpop.f32.mrb[10].mxu1 }
 0x4c6   : > { %v6129_v9 = vadd.f32 %v3482_v6, %v3470_v7  ;;  %v3472_v10 = vpop.f32.mrb[11].mxu1 }
 0x4c7   : > { %v6131_v13 = vadd.f32 %v3482_v6, %v3472_v10 }
 0x4c8   : > { %v6134_v15 = vsel %vm3494_vm14, %v6129_v9, %v3490_v8  ;;  %v5311_v8 = vld [vmem:[%s6411_s2 + $0x1d0] sm:$0xff] }
 0x4c9   : > { %v3496_v21 = vsel %vm3494_vm14, %v6131_v13, %v3491_v11  ;;  %3505 = vrot.lane.b32.xlu1 %v6134_v15, %s5478_s22 }
 0x4ca   : > { %3507 = vrot.lane.b32.xlu0 %v3496_v21, %s5478_s22 }
 0x4cd   : > { %3497 = vrot.lane.b32.xlu1 %v6134_v15, %s5477_s21 }
 0x4ce   : > { %3499 = vrot.lane.b32.xlu0 %v3496_v21, %s5477_s21 }
 0x4d1   : > { %3513 = vrot.lane.b32.xlu1 %v6134_v15, %s5479_s23 }
 0x4d2   : > { %3515 = vrot.lane.b32.xlu0 %v3496_v21, %s5479_s23 }
 0x4d5   : > { %3521 = vrot.lane.b32.xlu1 %v6134_v15, %s5480_s24 }
 0x4d6   : > { %3523 = vrot.lane.b32.xlu0 %v3496_v21, %s5480_s24 }
 0x4d9   : > { %3529 = vrot.lane.b32.xlu1 %v6134_v15, %s5481_s25 }
 0x4da   : > { %3531 = vrot.lane.b32.xlu0 %v3496_v21, %s5481_s25 }
 0x4dd   : > { %3537 = vrot.lane.b32.xlu1 %v6134_v15, %s5482_s26 }
 0x4de   : > { %3539 = vrot.lane.b32.xlu0 %v3496_v21, %s5482_s26 }
 0x4e1   : > { %3545 = vrot.lane.b32.xlu1 %v6134_v15, %s5483_s27 }
 0x4e2   : > { %3547 = vrot.lane.b32.xlu0 %v3496_v21, %s5483_s27 }
 0x4e5   : > { %3553 = vrot.lane.b32.xlu1 %v6134_v15, %s5484_s28 }
 0x4e6   : > { %3555 = vrot.lane.b32.xlu0 %v3496_v21, %s5484_s28 }
 0x4e9   : > { %4317 = vperm.xlu1 %5467, %v5331_v56  }
 0x53b   : > { %v3506_v58 = vpop.permute.xlu1 %3505 }
 0x53c   : > { %v3508_v22 = vpop.permute.xlu0 %3507 }
 0x53d   : > { %v3509_v23 = vsel %vm235_vm2, %v3506_v58, %v3508_v22  ;;  %v3510_v24 = vsel %vm235_vm2, %v3508_v22, %v3506_v58  ;;  %v5315_v22 = vld [vmem:[%s6411_s2 + $0x1d8] sm:$0xff] }
 0x53e   : > { %v3511_v25 = vmul.f32 %v3510_v24, %v5598_v18  ;;  %v3512_v26 = vmul.f32 %v3509_v23, %v5601_v19 }
 0x53f   : > { %v3498_v27 = vpop.permute.xlu1 %3497 }
 0x540   : > { %5297 = vmatprep.subr.msk.mxu0 %vm205_vm0, %v3512_v26  ;;  %v3500_v32 = vpop.permute.xlu0 %3499 }
 0x541   : > { %v3501_v33 = vsel %vm214_vm1, %v3498_v27, %v3500_v32  ;;  %v3502_v34 = vsel %vm214_vm1, %v3500_v32, %v3498_v27  ;;  %5298 = vmatpush1.msk.msra.mxu0 %vm205_vm0, %v3511_v25  ;;  %v5319_v32 = vld [vmem:[%s6411_s2 + $0x1e0] sm:$0xff] }
 0x542   : > { %v3503_v35 = vmul.f32 %v3502_v34, %v5604_v20  ;;  %v3504_v3 = vmul.f32 %v3501_v33, %v5594_v17  ;;  %5299 = vmatmul.mubr.msk.f32.vlgmr.msra.gmra.mrb[8].mxu0 %vm1958_vm12, %v5296_v29 }
 0x543   : > { %v3514_v37 = vpop.permute.xlu1 %3513  ;;  %3718 = vmatprep.mubr.f32.mxu0 %v5476_v5 }
 0x544   : > { %5300 = vmatprep.subr.msk.mxu0 %vm205_vm0, %v3504_v3  ;;  %v3516_v38 = vpop.permute.xlu0 %3515  ;;  %v5323_v3 = vld [vmem:[%s6411_s2 + $0x1e8] sm:$0xff] }
 0x545   : > { %v3517_v2 = vsel %vm257_vm4, %v3514_v37, %v3516_v38  ;;  %5301 = vmatpush1.msk.msra.mxu0 %vm205_vm0, %v3503_v35  ;;  %v3518_v40 = vsel %vm257_vm4, %v3516_v38, %v3514_v37  ;;  %v5327_v38 = vld [vmem:[%s6411_s2 + $0x1f0] sm:$0xff] }
 0x546   : > { %v3520_v41 = vmul.f32 %v3517_v2, %v5622_v31  ;;  %v3519_v46 = vmul.f32 %v3518_v40, %v5641_v39 }
 0x547   : > { %v3522_v43 = vpop.permute.xlu1 %3521 }
 0x548   : > { %5304 = vmatprep.subr.msk.mxu0 %vm205_vm0, %v3520_v41  ;;  %v3524_v45 = vpop.permute.xlu0 %3523 }
 0x549   : > { %v3525_v47 = vsel %vm279_vm6, %v3522_v43, %v3524_v45  ;;  %v3526_v50 = vsel %vm279_vm6, %v3524_v45, %v3522_v43 }
 0x54a   : > { %v3528_v49 = vmul.f32 %v3525_v47, %v5648_v42  ;;  %5302 = vmatmul.mubr.msk.f32.vlgmr.msra.gmra.mrb[8].mxu0 %vm1958_vm12, %v5295_v44  ;;  %v3527_v52 = vmul.f32 %v3526_v50, %v5660_v48  ;;  %v5350_v47 = vld [vmem:[%s6412_s3 + $0x38] sm:$0xff] }
 0x54b   : > { %5305 = vmatpush1.msk.msra.mxu0 %vm205_vm0, %v3519_v46  ;;  %3800 = vmatprep.mubr.f32.mxu0 %v5476_v5  ;;  %v3530_v53 = vpop.permute.xlu1 %3529 }
 0x54c   : > { %5308 = vmatprep.subr.msk.mxu0 %vm205_vm0, %v3528_v49  ;;  %v3532_v54 = vpop.permute.xlu0 %3531 }
 0x54d   : > { %v3534_v57 = vsel %vm301_vm7, %v3532_v54, %v3530_v53  ;;  %v3533_v6 = vsel %vm301_vm7, %v3530_v53, %v3532_v54 }
 0x54e   : > { %v3536_v60 = vmul.f32 %v3534_v57, %v5680_v55  ;;  %v3535_v10 = vmul.f32 %v3533_v6, %v5696_v62 }
 0x54f   : > { %v3538_v61 = vpop.permute.xlu1 %3537 }
 0x550   : > { %v3540_v63 = vpop.permute.xlu0 %3539 }
 0x551   : > { %v3542_v7 = vsel %vm323_vm8, %v3540_v63, %v3538_v61  ;;  %v3541_v56 = vsel %vm323_vm8, %v3538_v61, %v3540_v63 }
 0x552   : > { %5306 = vmatmul.mubr.msk.f32.vlgmr.msra.gmra.mrb[8].mxu0 %vm1958_vm12, %v5303_v51  ;;  %v3544_v11 = vmul.f32 %v3542_v7, %v5703_v4  ;;  %v3543_v23 = vmul.f32 %v3541_v56, %v5719_v14 }
 0x553   : > { %5309 = vmatpush1.msk.msra.mxu0 %vm205_vm0, %v3527_v52  ;;  %3884 = vmatprep.mubr.f32.mxu0 %v5476_v5 }
 0x554   : > { %5312 = vmatprep.subr.msk.mxu0 %vm205_vm0, %v3496_v21  ;;  %v3548_v21 = vpop.permute.xlu0 %3547 }
 0x558   : > { %v3556_v26 = vpop.permute.xlu0 %3555 }
 0x55a   : > { %5310 = vmatmul.mubr.msk.f32.vlgmr.msra.gmra.mrb[8].mxu0 %vm1958_vm12, %v5307_v59  ;;  %v5333_v59 = vld [vmem:[%s6411_s2 + $0x200] sm:$0xff] }
 0x55b   : > { %5313 = vmatpush1.msk.msra.mxu0 %vm205_vm0, %v6134_v15  ;;  %3968 = vmatprep.mubr.f32.mxu0 %v5476_v5  ;;  %v3546_v15 = vpop.permute.xlu1 %3545 }
 0x55c   : > { %5316 = vmatprep.subr.msk.mxu0 %vm205_vm0, %v3536_v60  ;;  %v3550_v58 = vsel %vm345_vm9, %v3548_v21, %v3546_v15  ;;  %v3549_v27 = vsel %vm345_vm9, %v3546_v15, %v3548_v21 }
 0x55d   : > { %v3552_v24 = vmul.f32 %v3550_v58, %v5726_v16  ;;  %v3551_v33 = vmul.f32 %v3549_v27, %v5742_v28 }
 0x55f   : > { %v3554_v25 = vpop.permute.xlu1 %3553 }
 0x560   : > { %v3558_v29 = vsel %vm367_vm10, %v3556_v26, %v3554_v25  ;;  %v3557_v35 = vsel %vm367_vm10, %v3554_v25, %v3556_v26  ;;  %v5338_v25 = vld [vmem:[%s6411_s2 + $0x210] sm:$0xff] }
 0x561   : > { %v3560_v34 = vmul.f32 %v3558_v29, %v5749_v30  ;;  %v3559_v37 = vmul.f32 %v3557_v35, %v5761_v36 }
 0x562   : > { %5314 = vmatmul.mubr.msk.f32.vlgmr.msra.gmra.mrb[8].mxu0 %vm1958_vm12, %v5311_v8 }
 0x563   : > { %5317 = vmatpush1.msk.msra.mxu0 %vm205_vm0, %v3535_v10  ;;  %4052 = vmatprep.mubr.f32.mxu0 %v5476_v5 }
 0x564   : > { %5320 = vmatprep.subr.msk.mxu0 %vm205_vm0, %v3544_v11 }
 0x568   : > { %v4318_v2 = vpop.permute.xlu1 %4317 }
 0x56a   : > { %5318 = vmatmul.mubr.msk.f32.vlgmr.msra.gmra.mrb[8].mxu0 %vm1958_vm12, %v5315_v22  ;;  %v5336_v22 = vld [vmem:[%s6411_s2 + $0x208] sm:$0xff] }
 0x56b   : > { %5321 = vmatpush1.msk.msra.mxu0 %vm205_vm0, %v3543_v23  ;;  %4136 = vmatprep.mubr.f32.mxu0 %v5476_v5 }
 0x56c   : > { %5324 = vmatprep.subr.msk.mxu0 %vm205_vm0, %v3552_v24 }
 0x572   : > { %5322 = vmatmul.mubr.msk.f32.vlgmr.msra.gmra.mrb[8].mxu0 %vm1958_vm12, %v5319_v32 }
 0x573   : > { %5325 = vmatpush1.msk.msra.mxu0 %vm205_vm0, %v3551_v33  ;;  %4220 = vmatprep.mubr.f32.mxu0 %v5476_v5  ;;  %v5340_v33 = vld [vmem:[%s6411_s2 + $0x218] sm:$0xff] }
 0x574   : > { %5328 = vmatprep.subr.msk.mxu0 %vm205_vm0, %v3560_v34 }
 0x57a   : > { %5326 = vmatmul.mubr.msk.f32.vlgmr.msra.gmra.mrb[8].mxu0 %vm1958_vm12, %v5323_v3 }
 0x57b   : > { %5329 = vmatpush1.msk.msra.mxu0 %vm205_vm0, %v3559_v37  ;;  %4304 = vmatprep.mubr.f32.mxu0 %v5476_v5 }
 0x582   : > { %5330 = vmatmul.mubr.msk.f32.vlgmr.msra.gmra.mrb[8].mxu0 %vm1958_vm12, %v5327_v38 }
 0x655   : > { %v4306_v40 = vpop.f32.mrb[8].mxu0 }
 0x656   : > { %v4320_v41 = vadd.f32 %v4318_v2, %v4306_v40  ;;  %v4308_v43 = vpop.f32.mrb[9].mxu0 }
 0x657   : > { %v4321_v44 = vadd.f32 %v4318_v2, %v4308_v43 }
 0x658   : > { %v6275_v45 = vmax.f32 %v4320_v41, 0.0 }
 0x659   : > { %v4323_v46 = vmax.f32 %v4321_v44, 0.0 }
 0x65a   : > { %4332 = vrot.lane.b32.xlu0 %v6275_v45, %s5478_s22 }
 0x65b   : > { %4334 = vrot.lane.b32.xlu1 %v4323_v46, %s5478_s22 }
 0x65e   : > { %4324 = vrot.lane.b32.xlu0 %v6275_v45, %s5477_s21 }
 0x65f   : > { %4326 = vrot.lane.b32.xlu1 %v4323_v46, %s5477_s21 }
 0x662   : > { %4340 = vrot.lane.b32.xlu0 %v6275_v45, %s5479_s23 }
 0x663   : > { %4342 = vrot.lane.b32.xlu1 %v4323_v46, %s5479_s23 }
 0x666   : > { %4348 = vrot.lane.b32.xlu0 %v6275_v45, %s5480_s24 }
 0x667   : > { %4350 = vrot.lane.b32.xlu1 %v4323_v46, %s5480_s24 }
 0x66a   : > { %4356 = vrot.lane.b32.xlu0 %v6275_v45, %s5481_s25 }
 0x66b   : > { %4358 = vrot.lane.b32.xlu1 %v4323_v46, %s5481_s25 }
 0x66e   : > { %4364 = vrot.lane.b32.xlu0 %v6275_v45, %s5482_s26 }
 0x66f   : > { %4366 = vrot.lane.b32.xlu1 %v4323_v46, %s5482_s26 }
 0x672   : > { %4372 = vrot.lane.b32.xlu0 %v6275_v45, %s5483_s27 }
 0x673   : > { %4374 = vrot.lane.b32.xlu1 %v4323_v46, %s5483_s27 }
 0x676   : > { %4380 = vrot.lane.b32.xlu0 %v6275_v45, %s5484_s28 }
 0x677   : > { %4382 = vrot.lane.b32.xlu1 %v4323_v46, %s5484_s28 }
 0x67a   : > { %5090 = vperm.xlu0 %5466, %v5350_v47   ;;  %v5346_v47 = vld [vmem:[%s6411_s2 + $0x230] sm:$0xff] }
 0x6cc   : > { %v4333_v49 = vpop.permute.xlu0 %4332 }
 0x6cd   : > { %v4335_v50 = vpop.permute.xlu1 %4334 }
 0x6ce   : > { %v4336_v51 = vsel %vm235_vm2, %v4333_v49, %v4335_v50  ;;  %v4337_v52 = vsel %vm235_vm2, %v4335_v50, %v4333_v49 }
 0x6cf   : > { %v4338_v53 = vmul.f32 %v4337_v52, %v5598_v18  ;;  %v4339_v54 = vmul.f32 %v4336_v51, %v5601_v19 }
 0x6d0   : > { %v4325_v57 = vpop.permute.xlu0 %4324 }
 0x6d1   : > { %4395 = vmatprep.subr.mxu1 %v4339_v54  ;;  %v4327_v60 = vpop.permute.xlu1 %4326 }
 0x6d2   : > { %v4328_v61 = vsel %vm214_vm1, %v4325_v57, %v4327_v60  ;;  %v4329_v63 = vsel %vm214_vm1, %v4327_v60, %v4325_v57  ;;  %4396 = vmatpush1.msra.mxu1 %v4338_v53 }
 0x6d3   : > { %v4330_v6 = vmul.f32 %v4329_v63, %v5604_v20  ;;  %v4331_v18 = vmul.f32 %v4328_v61, %v5594_v17  ;;  %5334 = vmatmul.mubr.msk.f32.vlgmr.msra.gmra.mrb[12].mxu1 %vm1216_vm11, %v5333_v59  ;;  %v5332_v17 = vld [vmem:[%s6411_s2 + $0x1f8] sm:$0xff] }
 0x6d4   : > { %v4341_v19 = vpop.permute.xlu0 %4340  ;;  %4533 = vmatprep.mubr.f32.mxu1 %v5476_v5 }
 0x6d5   : > { %4469 = vmatprep.subr.mxu1 %v4331_v18  ;;  %v4343_v7 = vpop.permute.xlu1 %4342 }
 0x6d6   : > { %v4344_v8 = vsel %vm257_vm4, %v4341_v19, %v4343_v7  ;;  %4470 = vmatpush1.msra.mxu1 %v4330_v6  ;;  %v4345_v10 = vsel %vm257_vm4, %v4343_v7, %v4341_v19 }
 0x6d7   : > { %v4347_v11 = vmul.f32 %v4344_v8, %v5622_v31  ;;  %v4346_v21 = vmul.f32 %v4345_v10, %v5641_v39 }
 0x6d8   : > { %v4349_v15 = vpop.permute.xlu0 %4348 }
 0x6d9   : > { %4545 = vmatprep.subr.mxu1 %v4347_v11  ;;  %v4351_v20 = vpop.permute.xlu1 %4350 }
 0x6da   : > { %v4352_v56 = vsel %vm279_vm6, %v4349_v15, %v4351_v20  ;;  %v4353_v31 = vsel %vm279_vm6, %v4351_v20, %v4349_v15 }
 0x6db   : > { %v4355_v58 = vmul.f32 %v4352_v56, %v5648_v42  ;;  %5335 = vmatmul.mubr.msk.f32.vlgmr.msra.gmra.mrb[12].mxu1 %vm1216_vm11, %v5332_v17  ;;  %v4354_v39 = vmul.f32 %v4353_v31, %v5660_v48 }
 0x6dc   : > { %4546 = vmatpush1.msra.mxu1 %v4346_v21  ;;  %4609 = vmatprep.mubr.f32.mxu1 %v5476_v5  ;;  %v4357_v42 = vpop.permute.xlu0 %4356 }
 0x6dd   : > { %4623 = vmatprep.subr.mxu1 %v4355_v58  ;;  %v4359_v23 = vpop.permute.xlu1 %4358 }
 0x6de   : > { %v4361_v24 = vsel %vm301_vm7, %v4359_v23, %v4357_v42  ;;  %v4360_v29 = vsel %vm301_vm7, %v4357_v42, %v4359_v23 }
 0x6df   : > { %v4363_v26 = vmul.f32 %v4361_v24, %v5680_v55  ;;  %v4362_v55 = vmul.f32 %v4360_v29, %v5696_v62  ;;  %v5342_v62 = vld [vmem:[%s6411_s2 + $0x220] sm:$0xff] }
 0x6e0   : > { %v4365_v48 = vpop.permute.xlu0 %4364 }
 0x6e1   : > { %v4367_v27 = vpop.permute.xlu1 %4366 }
 0x6e2   : > { %v4369_v32 = vsel %vm323_vm8, %v4367_v27, %v4365_v48  ;;  %v4368_v37 = vsel %vm323_vm8, %v4365_v48, %v4367_v27 }
 0x6e3   : > { %5337 = vmatmul.mubr.msk.f32.vlgmr.msra.gmra.mrb[12].mxu1 %vm1216_vm11, %v5336_v22  ;;  %v4371_v34 = vmul.f32 %v4369_v32, %v5703_v4  ;;  %v4370_v4 = vmul.f32 %v4368_v37, %v5719_v14  ;;  %v5344_v14 = vld [vmem:[%s6411_s2 + $0x228] sm:$0xff] }
 0x6e4   : > { %4624 = vmatpush1.msra.mxu1 %v4354_v39  ;;  %4687 = vmatprep.mubr.f32.mxu1 %v5476_v5  ;;  %v4373_v35 = vpop.permute.xlu0 %4372 }
 0x6e5   : > { %4701 = vmatprep.subr.mxu1 %v4323_v46  ;;  %v4375_v3 = vpop.permute.xlu1 %4374 }
 0x6e6   : > { %v4377_v38 = vsel %vm345_vm9, %v4375_v3, %v4373_v35  ;;  %v4376_v43 = vsel %vm345_vm9, %v4373_v35, %v4375_v3 }
 0x6e7   : > { %v4379_v2 = vmul.f32 %v4377_v38, %v5726_v16  ;;  %v4378_v16 = vmul.f32 %v4376_v43, %v5742_v28  ;;  %v5348_v28 = vld [vmem:[%s6411_s2 + $0x238] sm:$0xff] }
 0x6e8   : > { %v4381_v40 = vpop.permute.xlu0 %4380 }
 0x6e9   : > { %v4383_v41 = vpop.permute.xlu1 %4382 }
 0x6ea   : > { %v4385_v44 = vsel %vm367_vm10, %v4383_v41, %v4381_v40  ;;  %v4384_v46 = vsel %vm367_vm10, %v4381_v40, %v4383_v41 }
 0x6eb   : > { %5339 = vmatmul.mubr.msk.f32.vlgmr.msra.gmra.mrb[12].mxu1 %vm1216_vm11, %v5338_v25  ;;  %v4386_v49 = vmul.f32 %v4384_v46, %v5761_v36 }
 0x6ec   : > { %4702 = vmatpush1.msra.mxu1 %v6275_v45  ;;  %4765 = vmatprep.mubr.f32.mxu1 %v5476_v5  ;;  %v4387_v45 = vmul.f32 %v4385_v44, %v5749_v30  ;;  %v5101_v30 = vunpack.c.l.s4 %v5487_v12 }
 0x6ed   : > { %4779 = vmatprep.subr.mxu1 %v4363_v26 }
 0x6ee   : > { %v5102_v52 = vunpack.c.0.s8 %v5101_v30 }
 0x6f3   : > { %5341 = vmatmul.mubr.msk.f32.vlgmr.msra.gmra.mrb[12].mxu1 %vm1216_vm11, %v5340_v33 }
 0x6f4   : > { %4780 = vmatpush1.msra.mxu1 %v4362_v55  ;;  %4843 = vmatprep.mubr.f32.mxu1 %v5476_v5 }
 0x6f5   : > { %4857 = vmatprep.subr.mxu1 %v4371_v34 }
 0x6f9   : > { %v5091_v50 = vpop.permute.xlu0 %5090 }
 0x6fb   : > { %5343 = vmatmul.mubr.msk.f32.vlgmr.msra.gmra.mrb[12].mxu1 %vm1216_vm11, %v5342_v62 }
 0x6fc   : > { %4858 = vmatpush1.msra.mxu1 %v4370_v4  ;;  %4921 = vmatprep.mubr.f32.mxu1 %v5476_v5 }
 0x6fd   : > { %4935 = vmatprep.subr.mxu1 %v4379_v2 }
 0x703   : > { %5345 = vmatmul.mubr.msk.f32.vlgmr.msra.gmra.mrb[12].mxu1 %vm1216_vm11, %v5344_v14 }
 0x704   : > { %4936 = vmatpush1.msra.mxu1 %v4378_v16  ;;  %4999 = vmatprep.mubr.f32.mxu1 %v5476_v5 }
 0x705   : > { %5013 = vmatprep.subr.mxu1 %v4387_v45 }
 0x70b   : > { %5347 = vmatmul.mubr.msk.f32.vlgmr.msra.gmra.mrb[12].mxu1 %vm1216_vm11, %v5346_v47 }
 0x70c   : > { %5014 = vmatpush1.msra.mxu1 %v4386_v49  ;;  %5077 = vmatprep.mubr.f32.mxu1 %v5476_v5  ;;  %v5105_v5 = vsub.s32 %v5102_v52, %v5524_v1 }
 0x713   : > { %5349 = vmatmul.mubr.msk.f32.vlgmr.msra.gmra.mrb[12].mxu1 %vm1216_vm11, %v5348_v28 }
 0x7e6   : > { %v5079_v51 = vpop.f32.mrb[12].mxu1 }
 0x7e7   : > { %v5093_v53 = vadd.f32 %v5091_v50, %v5079_v51  ;;  %v5081_v54 = vpop.f32.mrb[13].mxu1 }
 0x7e8   : > { %v5094_v36 = vadd.f32 %v5091_v50, %v5081_v54 }
 0x7e9   : > { %v5095_v57 = vadd.f32 %v5093_v53, %v6129_v9 }
 0x7ea   : > { %v5096_v59 = vadd.f32 %v5094_v36, %v6131_v13 }
 0x7ec   : > { %v5099_v60 = vcombine.low %v5095_v57, %v5096_v59 }
 0x7ee   : > { %v5106_v61 = vrot.slane %v5099_v60, %v5105_v5 }
 0x7f0   : > { %v5113_v63 = vrot.slane %v5106_v61, %v5105_v5 }
 0x7f2   : > { %5119 = vst.msk [vmem:[%s192_s13] sm:$0x3] %vm5117_vm15, %v5113_v63 }
 0x7f3 PF: > { %s14_s15 = sadd.s32 1, %s5474_s15  }
 0x7f4   : > { %p11_p4 = scmp.ge.s32.totalorder %s14_s15, 4  }
 0x7f6   :  { %13 = sbr.rel (!%p11_p4) target bundleno = 1 (0x1), region = 131 }

</bundles_post_ra>
